<compile_context>
chip_gen: v7x
topology: tpu7x:2x2x1
jax: 0.10.0
libtpu: 0.0.40
codegen_flags: <defaults>
</compile_context>

<pallas_src>
import functools
import math

import jax
import jax.numpy as jnp
from jax.experimental import pallas as pl
from jax.experimental.pallas import tpu as pltpu


# -----------------------------------------------------------------------------
# Kernel 1: fused Conv2d(3x3, pad=1) + bias + ReLU + BatchNorm(eval)
#           [+ optional fused MaxPool2d(2,2) for the last conv of a block]
#
# Grid: (N, Cout//TCout, H//TH).  Each program computes a TH-row strip of the
# output for one Cout tile.  The zero-padded input is passed twice: a TH-row
# "main" block and a 2-row "halo" block (the two rows just below), so blocks
# never overlap and plain Blocked BlockSpecs suffice.  Per kh row-window the
# three kw taps are fused into one (TH*W, 3*Cin) x (3*Cin, TCout) MXU dot
# (bf16 in, f32 accumulate into a VMEM scratch ref); for small Cin all nine
# taps fuse into a single dot with K = 9*Cin.
# -----------------------------------------------------------------------------
def conv3x3_relu_bn_kernel(xm_ref, xh_ref, w_ref, b_ref, scale_ref, shift_ref,
                           o_ref, acc_ref, *, pool):
    # xm_ref:    (1, TH, W+2, Cin)   main rows of the zero-padded input (bf16)
    # xh_ref:    (1, 2,  W+2, Cin)   2-row bottom halo (bf16)
    # w_ref:     (3, 3*Cin, TCout)   bf16 weights, kh-major, rows = (kw, Cin)
    # b_ref:     (1, TCout)          conv bias (f32)
    # scale_ref: (1, TCout)          gamma / sqrt(running_var + eps)   (f32)
    # shift_ref: (1, TCout)          beta - running_mean * scale       (f32)
    # o_ref:     (1, TH, W, TCout)   or (1, TH//2, W//2, TCout) if pool
    # acc_ref:   (TH*W, TCout) f32 VMEM scratch accumulator
    _, TH, Wp, Cin = xm_ref.shape
    W = Wp - 2
    TCout = o_ref.shape[-1]

    xm = xm_ref[0]                       # (TH, Wp, Cin)
    xh = xh_ref[0]                       # (2,  Wp, Cin)

    def kw_slab(rows):
        # (TH, Wp, Cin) -> im2col over the 3 kw taps: (TH*W, 3*Cin)
        return jnp.concatenate(
            [rows[:, 0:W, :], rows[:, 1:W + 1, :], rows[:, 2:W + 2, :]],
            axis=-1).reshape(TH * W, 3 * Cin)

    # Row windows for kh = 0/1/2 built from main rows + halo (no full concat
    # of a (TH+2)-row strip).
    rows1 = jnp.concatenate([xm[1:], xh[0:1]], axis=0)
    rows2 = xh if TH == 2 else jnp.concatenate([xm[2:], xh], axis=0)

    if Cin <= 32:
        # Small-Cin (first-layer) special case: one dot with K = 9*Cin so the
        # MXU contraction depth is not wasted on a 3/4-channel input.
        slab = jnp.concatenate([kw_slab(xm), kw_slab(rows1), kw_slab(rows2)],
                               axis=-1)                      # (TH*W, 9*Cin)
        acc_ref[...] = jnp.dot(slab, w_ref[...].reshape(9 * Cin, TCout),
                               preferred_element_type=jnp.float32)
    else:
        # One dot per kh row-window, K = 3*Cin, accumulated in f32 VMEM.
        acc_ref[...] = jnp.dot(kw_slab(xm), w_ref[0],
                               preferred_element_type=jnp.float32)
        acc_ref[...] += jnp.dot(kw_slab(rows1), w_ref[1],
                                preferred_element_type=jnp.float32)
        acc_ref[...] += jnp.dot(kw_slab(rows2), w_ref[2],
                                preferred_element_type=jnp.float32)

    # Fused epilogue (broadcasts applied once per tile).
    y = jnp.maximum(acc_ref[...] + b_ref[...], 0.0)    # conv bias + ReLU
    y = y * scale_ref[...] + shift_ref[...]            # BatchNorm (eval, folded)
    y = y.reshape(TH, W, TCout)
    if pool:                                           # fused MaxPool2d(2, 2)
        y = y.reshape(TH // 2, 2, W // 2, 2, TCout)
        y = jnp.max(y, axis=(1, 3))
    o_ref[0] = y.astype(o_ref.dtype)


def _conv_row_tile(H, W):
    """Smallest even divisor of H giving a matmul M-dim (TH*W) >= 128."""
    assert H % 2 == 0, "spatial tiling assumes even height"
    cands = [th for th in range(2, H + 1, 2) if H % th == 0]
    for th in cands:
        if th * W >= 128:
            return th
    return cands[-1]


def _largest_tile(dim, cap):
    """Largest divisor of `dim` that is <= cap."""
    if dim <= cap:
        return dim
    for t in range(cap, 0, -1):
        if dim % t == 0:
            return t
    return dim


def conv3x3_relu_bn(x_nhwc, w_mat, bias, bn_scale, bn_shift, *, pool):
    N, H, W, Cin = x_nhwc.shape
    Cout = w_mat.shape[-1]
    assert H % 2 == 0 and W % 2 == 0
    TH = _conv_row_tile(H, W)
    HT = H // TH
    TCout = _largest_tile(Cout, 256)      # bounds accumulator / MXU N-tile
    CT = Cout // TCout
    Wp = W + 2
    halo_blk = TH // 2                    # halo BlockSpec block size is 2 rows

    # padding=1 (glue).  TODO(synk): fold padding into the producer's output.
    xp = jnp.pad(x_nhwc, ((0, 0), (1, 1), (1, 1), (0, 0)))   # (N, H+2, Wp, Cin)

    if pool:
        Ho, Wo, THo = H // 2, W // 2, TH // 2
    else:
        Ho, Wo, THo = H, W, TH

    return pl.pallas_call(
        functools.partial(conv3x3_relu_bn_kernel, pool=pool),
        out_shape=jax.ShapeDtypeStruct((N, Ho, Wo, Cout), jnp.bfloat16),
        grid=(N, CT, HT),
        in_specs=[
            # main TH rows of the padded input: rows [t*TH, t*TH + TH)
            pl.BlockSpec((1, TH, Wp, Cin), lambda n, co, t: (n, t, 0, 0)),
            # 2-row halo just below: rows [t*TH + TH, t*TH + TH + 2)
            pl.BlockSpec((1, 2, Wp, Cin),
                         lambda n, co, t: (n, (t + 1) * halo_blk, 0, 0)),
            pl.BlockSpec((3, 3 * Cin, TCout), lambda n, co, t: (0, 0, co)),
            pl.BlockSpec((1, TCout), lambda n, co, t: (0, co)),
            pl.BlockSpec((1, TCout), lambda n, co, t: (0, co)),
            pl.BlockSpec((1, TCout), lambda n, co, t: (0, co)),
        ],
        out_specs=pl.BlockSpec((1, THo, Wo, TCout),
                               lambda n, co, t: (n, t, 0, co)),
        scratch_shapes=[pltpu.VMEM((TH * W, TCout), jnp.float32)],
        compiler_params=pltpu.CompilerParams(
            dimension_semantics=("parallel", "parallel", "parallel")),
    )(xp, xp, w_mat, bias.reshape(1, -1), bn_scale.reshape(1, -1),
      bn_shift.reshape(1, -1))


# -----------------------------------------------------------------------------
# Kernel 2: Linear (tiled matmul) with fused bias and optional ReLU.
# Grid: (Fout_tiles, K_tiles), K innermost ("arbitrary"), f32 VMEM accumulator.
# Weights and activations are bf16; accumulation is f32.
# -----------------------------------------------------------------------------
def linear_kernel(x_ref, w_ref, b_ref, o_ref, acc_ref, *, apply_relu):
    k = pl.program_id(1)

    @pl.when(k == 0)
    def _():
        acc_ref[...] = jnp.zeros_like(acc_ref)

    x = x_ref[...]
    if x.dtype != jnp.bfloat16:
        x = x.astype(jnp.bfloat16)
    acc_ref[...] += jnp.dot(x, w_ref[...], preferred_element_type=jnp.float32)

    @pl.when(k == pl.num_programs(1) - 1)
    def _():
        r = acc_ref[...] + b_ref[...]
        if apply_relu:
            r = jnp.maximum(r, 0.0)
        o_ref[...] = r.astype(o_ref.dtype)


def linear(x, w, b, *, relu, out_dtype):
    B, Fin = x.shape
    Fin2, Fout = w.shape
    assert Fin == Fin2
    # NOTE(v5e/v7x): tk=1024/tn=2048 bf16 weight tiles are ~4 MiB x 2 buffers;
    # fine under the default scoped-VMEM limits at small batch.  Revisit (set
    # vmem_limit_bytes or shrink tn) if B grows past ~128.
    tk = _largest_tile(Fin, 1024)     # K tile
    tn = _largest_tile(Fout, 2048)    # lane-dense output tile
    grid = (Fout // tn, Fin // tk)
    return pl.pallas_call(
        functools.partial(linear_kernel, apply_relu=relu),
        out_shape=jax.ShapeDtypeStruct((B, Fout), out_dtype),
        grid=grid,
        in_specs=[
            pl.BlockSpec((B, tk), lambda j, k: (0, k)),
            pl.BlockSpec((tk, tn), lambda j, k: (k, j)),
            pl.BlockSpec((1, tn), lambda j, k: (0, j)),
        ],
        out_specs=pl.BlockSpec((B, tn), lambda j, k: (0, j)),
        scratch_shapes=[pltpu.VMEM((B, tn), jnp.float32)],
        compiler_params=pltpu.CompilerParams(
            dimension_semantics=("parallel", "arbitrary")),
    )(x, w, b.reshape(1, Fout))


# -----------------------------------------------------------------------------
# Full VGG forward (glue around the kernels)
# -----------------------------------------------------------------------------
def vgg_forward(x_nchw, params):
    # Accept NCHW like the PyTorch module; compute in NHWC, bf16 activations.
    x = jnp.transpose(x_nchw, (0, 2, 3, 1)).astype(jnp.bfloat16)
    for block in params["conv_blocks"]:
        last = len(block) - 1
        for li, (w, b, scale, shift) in enumerate(block):
            x = conv3x3_relu_bn(x, w, b, scale, shift, pool=(li == last))
    # Flatten directly in NHWC order; fc1's weight rows were permuted at init
    # so this matches PyTorch's NCHW flatten exactly (no runtime transpose).
    x = x.reshape(x.shape[0], -1)
    w1, b1 = params["fc1"]
    w2, b2 = params["fc2"]
    w3, b3 = params["fc3"]
    x = linear(x, w1, b1, relu=True, out_dtype=jnp.bfloat16)    # Dropout: identity (eval)
    x = linear(x, w2, b2, relu=True, out_dtype=jnp.bfloat16)    # Dropout: identity (eval)
    x = linear(x, w3, b3, relu=False, out_dtype=jnp.float32)
    # fc3 was lane-padded to a multiple of 128 at init; slice the real logits.
    return x[:, :params["num_classes"]]


# -----------------------------------------------------------------------------
# Deterministic parameter initialization (xavier_normal_ like init_cnn).
# Weights stored in bf16 (f32 accumulation in kernels); BN folded into a
# per-channel scale/shift using eval-mode running statistics.
# -----------------------------------------------------------------------------
def _xavier_normal(key, shape, fan_in, fan_out):
    std = math.sqrt(2.0 / (fan_in + fan_out))
    return std * jax.random.normal(key, shape, dtype=jnp.float32)


def init_params(key, arch, in_channels, in_hw, num_classes, hidden=4096):
    n_convs = sum(nc for nc, _ in arch)
    keys = jax.random.split(key, n_convs + 3)
    ki = 0
    conv_blocks = []
    c, hw = in_channels, in_hw
    eps = 1e-5
    for num_convs, out_c in arch:
        block = []
        for _ in range(num_convs):
            w = _xavier_normal(keys[ki], (3, 3, c, out_c), 9 * c, 9 * out_c)
            ki += 1
            # kh-major layout, each kh slab has (kw, Cin)-ordered rows.
            w = w.reshape(3, 3 * c, out_c).astype(jnp.bfloat16)
            bias = jnp.zeros((out_c,), jnp.float32)
            gamma = jnp.ones((out_c,), jnp.float32)
            beta = jnp.zeros((out_c,), jnp.float32)
            run_mean = jnp.zeros((out_c,), jnp.float32)
            run_var = jnp.ones((out_c,), jnp.float32)
            scale = gamma / jnp.sqrt(run_var + eps)
            shift = beta - run_mean * scale
            block.append((w, bias, scale, shift))
            c = out_c
        conv_blocks.append(block)
        hw //= 2
    flat = c * hw * hw
    # fc1: generate logically in PyTorch's NCHW-flatten row order, then permute
    # the rows once to NHWC-flatten order so the runtime flatten is a reshape.
    fc1_w = _xavier_normal(keys[ki], (c, hw, hw, hidden), flat, hidden)
    fc1_w = jnp.transpose(fc1_w, (1, 2, 0, 3)).reshape(flat, hidden)
    ki += 1
    fc2_w = _xavier_normal(keys[ki], (hidden, hidden), hidden, hidden)
    ki += 1
    # fc3: pad the output dim up to a multiple of 128 lanes (zero columns);
    # logits are sliced back outside the kernel.
    ncls_pad = ((num_classes + 127) // 128) * 128
    fc3_w = _xavier_normal(keys[ki], (hidden, num_classes), hidden, num_classes)
    fc3_w = jnp.pad(fc3_w, ((0, 0), (0, ncls_pad - num_classes)))
    return {
        "conv_blocks": conv_blocks,
        "fc1": (fc1_w.astype(jnp.bfloat16), jnp.zeros((hidden,), jnp.float32)),
        "fc2": (fc2_w.astype(jnp.bfloat16), jnp.zeros((hidden,), jnp.float32)),
        "fc3": (fc3_w.astype(jnp.bfloat16), jnp.zeros((ncls_pad,), jnp.float32)),
        "num_classes": num_classes,
    }


if __name__ == "__main__":
    arch = ((1, 8), (1, 16))      # small VGG-style arch: two blocks
    num_classes = 8
    hidden = 1024                 # PyTorch default is 4096; small for the demo
    key = jax.random.PRNGKey(0)
    kx, kp = jax.random.split(key)

    # NCHW input like the PyTorch module
    x = jax.random.normal(kx, (2, 4, 16, 16), dtype=jnp.float32)
    params = init_params(kp, arch, in_channels=4, in_hw=16,
                         num_classes=num_classes, hidden=hidden)

    out = vgg_forward(x, params)
    out = jax.block_until_ready(out)
    assert out.shape == (2, num_classes), out.shape
    assert bool(jnp.all(jnp.isfinite(out)))
    print("KERNEL_OK")
</pallas_src>

<mosaic_0001>
module attributes {stable_mosaic.version = 11 : i64} {
  func.func @conv3x3_relu_bn_kernel(%arg0: i32, %arg1: i32, %arg2: i32, %arg3: memref<1x8x18x4xbf16, #tpu.memory_space<vmem>>, %arg4: memref<1x2x18x4xbf16, #tpu.memory_space<vmem>>, %arg5: memref<3x12x8xbf16, #tpu.memory_space<vmem>>, %arg6: memref<1x8xf32, #tpu.memory_space<vmem>>, %arg7: memref<1x8xf32, #tpu.memory_space<vmem>>, %arg8: memref<1x8xf32, #tpu.memory_space<vmem>>, %arg9: memref<1x4x8x8xbf16, #tpu.memory_space<vmem>>, %arg10: memref<128x8xf32, #tpu.memory_space<vmem>>) attributes {dimension_semantics = [#tpu.dimension_semantics<parallel>, #tpu.dimension_semantics<parallel>, #tpu.dimension_semantics<parallel>], iteration_bounds = array<i64: 2, 1, 2>, scalar_prefetch = 0 : i64, scratch_operands = 1 : i64, tpu.core_type = #tpu.core_type<tc>, window_params = [{transform_indices = @transform_0, window_bounds = array<i64: 1, 8, 18, 4>}, {transform_indices = @transform_1, window_bounds = array<i64: 1, 2, 18, 4>}, {transform_indices = @transform_2, window_bounds = array<i64: 3, 12, 8>}, {transform_indices = @transform_3, window_bounds = array<i64: 1, 8>}, {transform_indices = @transform_4, window_bounds = array<i64: 1, 8>}, {transform_indices = @transform_5, window_bounds = array<i64: 1, 8>}, {transform_indices = @transform_6, window_bounds = array<i64: 1, 4, 8, 8>}]} {
    %c0 = arith.constant 0 : index
    %c0_0 = arith.constant 0 : index
    %c0_1 = arith.constant 0 : index
    %c0_2 = arith.constant 0 : index
    %0 = vector.load %arg3[%c0, %c0_0, %c0_1, %c0_2] : memref<1x8x18x4xbf16, #tpu.memory_space<vmem>>, vector<1x8x18x4xbf16>
    %1 = vector.shape_cast %0 : vector<1x8x18x4xbf16> to vector<8x18x4xbf16>
    %c0_3 = arith.constant 0 : index
    %c0_4 = arith.constant 0 : index
    %c0_5 = arith.constant 0 : index
    %c0_6 = arith.constant 0 : index
    %2 = vector.load %arg4[%c0_3, %c0_4, %c0_5, %c0_6] : memref<1x2x18x4xbf16, #tpu.memory_space<vmem>>, vector<1x2x18x4xbf16>
    %3 = vector.shape_cast %2 : vector<1x2x18x4xbf16> to vector<2x18x4xbf16>
    %4 = vector.extract_strided_slice %1 {offsets = [1, 0, 0], sizes = [7, 18, 4], strides = [1, 1, 1]} : vector<8x18x4xbf16> to vector<7x18x4xbf16>
    %5 = vector.extract_strided_slice %3 {offsets = [0, 0, 0], sizes = [1, 18, 4], strides = [1, 1, 1]} : vector<2x18x4xbf16> to vector<1x18x4xbf16>
    %6 = tpu.concatenate %4, %5 in 0 : vector<7x18x4xbf16>, vector<1x18x4xbf16> -> vector<8x18x4xbf16>
    %7 = vector.extract_strided_slice %1 {offsets = [2, 0, 0], sizes = [6, 18, 4], strides = [1, 1, 1]} : vector<8x18x4xbf16> to vector<6x18x4xbf16>
    %8 = tpu.concatenate %7, %3 in 0 : vector<6x18x4xbf16>, vector<2x18x4xbf16> -> vector<8x18x4xbf16>
    %9 = vector.extract_strided_slice %1 {offsets = [0, 0, 0], sizes = [8, 16, 4], strides = [1, 1, 1]} : vector<8x18x4xbf16> to vector<8x16x4xbf16>
    %10 = vector.extract_strided_slice %1 {offsets = [0, 1, 0], sizes = [8, 16, 4], strides = [1, 1, 1]} : vector<8x18x4xbf16> to vector<8x16x4xbf16>
    %11 = vector.extract_strided_slice %1 {offsets = [0, 2, 0], sizes = [8, 16, 4], strides = [1, 1, 1]} : vector<8x18x4xbf16> to vector<8x16x4xbf16>
    %12 = tpu.concatenate %9, %10, %11 in 2 : vector<8x16x4xbf16>, vector<8x16x4xbf16>, vector<8x16x4xbf16> -> vector<8x16x12xbf16>
    %13 = vector.shape_cast %12 : vector<8x16x12xbf16> to vector<128x12xbf16>
    %14 = vector.extract_strided_slice %6 {offsets = [0, 0, 0], sizes = [8, 16, 4], strides = [1, 1, 1]} : vector<8x18x4xbf16> to vector<8x16x4xbf16>
    %15 = vector.extract_strided_slice %6 {offsets = [0, 1, 0], sizes = [8, 16, 4], strides = [1, 1, 1]} : vector<8x18x4xbf16> to vector<8x16x4xbf16>
    %16 = vector.extract_strided_slice %6 {offsets = [0, 2, 0], sizes = [8, 16, 4], strides = [1, 1, 1]} : vector<8x18x4xbf16> to vector<8x16x4xbf16>
    %17 = tpu.concatenate %14, %15, %16 in 2 : vector<8x16x4xbf16>, vector<8x16x4xbf16>, vector<8x16x4xbf16> -> vector<8x16x12xbf16>
    %18 = vector.shape_cast %17 : vector<8x16x12xbf16> to vector<128x12xbf16>
    %19 = vector.extract_strided_slice %8 {offsets = [0, 0, 0], sizes = [8, 16, 4], strides = [1, 1, 1]} : vector<8x18x4xbf16> to vector<8x16x4xbf16>
    %20 = vector.extract_strided_slice %8 {offsets = [0, 1, 0], sizes = [8, 16, 4], strides = [1, 1, 1]} : vector<8x18x4xbf16> to vector<8x16x4xbf16>
    %21 = vector.extract_strided_slice %8 {offsets = [0, 2, 0], sizes = [8, 16, 4], strides = [1, 1, 1]} : vector<8x18x4xbf16> to vector<8x16x4xbf16>
    %22 = tpu.concatenate %19, %20, %21 in 2 : vector<8x16x4xbf16>, vector<8x16x4xbf16>, vector<8x16x4xbf16> -> vector<8x16x12xbf16>
    %23 = vector.shape_cast %22 : vector<8x16x12xbf16> to vector<128x12xbf16>
    %24 = tpu.concatenate %13, %18, %23 in 1 : vector<128x12xbf16>, vector<128x12xbf16>, vector<128x12xbf16> -> vector<128x36xbf16>
    %c0_7 = arith.constant 0 : index
    %c0_8 = arith.constant 0 : index
    %c0_9 = arith.constant 0 : index
    %25 = vector.load %arg5[%c0_7, %c0_8, %c0_9] : memref<3x12x8xbf16, #tpu.memory_space<vmem>>, vector<3x12x8xbf16>
    %26 = vector.shape_cast %25 : vector<3x12x8xbf16> to vector<36x8xbf16>
    %cst = arith.constant dense<0.000000e+00> : vector<128x8xf32>
    %27 = tpu.matmul %24, %26, %cst {dimension_numbers = #tpu.dot_dimension_numbers<[1], [0], [0], [1], [0, 0, 1, 1], [], []>} : vector<128x36xbf16>, vector<36x8xbf16>, vector<128x8xf32> -> vector<128x8xf32>
    %c0_10 = arith.constant 0 : index
    %c0_11 = arith.constant 0 : index
    %28 = vector.load %arg10[%c0_10, %c0_11] : memref<128x8xf32, #tpu.memory_space<vmem>>, vector<128x8xf32>
    tpu.vector_store %arg10[%c0_10, %c0_11], %27 {strides = array<i32>} : memref<128x8xf32, #tpu.memory_space<vmem>>, vector<128x8xf32>,
    %c0_12 = arith.constant 0 : index
    %c0_13 = arith.constant 0 : index
    %29 = vector.load %arg10[%c0_12, %c0_13] : memref<128x8xf32, #tpu.memory_space<vmem>>, vector<128x8xf32>
    %c0_14 = arith.constant 0 : index
    %c0_15 = arith.constant 0 : index
    %30 = vector.load %arg6[%c0_14, %c0_15] : memref<1x8xf32, #tpu.memory_space<vmem>>, vector<1x8xf32>
    %31 = vector.broadcast %30 : vector<1x8xf32> to vector<128x8xf32>
    %32 = arith.addf %29, %31 : vector<128x8xf32>
    %cst_16 = arith.constant 0.000000e+00 : f32
    %33 = vector.broadcast %cst_16 : f32 to vector<128x8xf32>
    %34 = arith.maximumf %32, %33 : vector<128x8xf32>
    %c0_17 = arith.constant 0 : index
    %c0_18 = arith.constant 0 : index
    %35 = vector.load %arg7[%c0_17, %c0_18] : memref<1x8xf32, #tpu.memory_space<vmem>>, vector<1x8xf32>
    %36 = vector.broadcast %35 : vector<1x8xf32> to vector<128x8xf32>
    %37 = arith.mulf %34, %36 : vector<128x8xf32>
    %c0_19 = arith.constant 0 : index
    %c0_20 = arith.constant 0 : index
    %38 = vector.load %arg8[%c0_19, %c0_20] : memref<1x8xf32, #tpu.memory_space<vmem>>, vector<1x8xf32>
    %39 = vector.broadcast %38 : vector<1x8xf32> to vector<128x8xf32>
    %40 = arith.addf %37, %39 : vector<128x8xf32>
    %41 = vector.shape_cast %40 : vector<128x8xf32> to vector<8x16x8xf32>
    %42 = vector.shape_cast %41 : vector<8x16x8xf32> to vector<4x2x8x2x8xf32>
    %cst_21 = arith.constant dense<0xFF800000> : vector<4x8x8xf32>
    %43 = vector.multi_reduction <maximumf>, %42, %cst_21 [1, 3] : vector<4x2x8x2x8xf32> to vector<4x8x8xf32>
    %44 = arith.truncf %43 : vector<4x8x8xf32> to vector<4x8x8xbf16>
    %c0_22 = arith.constant 0 : index
    %c0_23 = arith.constant 0 : index
    %c0_24 = arith.constant 0 : index
    %c0_25 = arith.constant 0 : index
    %45 = vector.load %arg9[%c0_22, %c0_23, %c0_24, %c0_25] : memref<1x4x8x8xbf16, #tpu.memory_space<vmem>>, vector<1x4x8x8xbf16>
    %46 = vector.shape_cast %45 : vector<1x4x8x8xbf16> to vector<4x8x8xbf16>
    %47 = vector.shape_cast %44 : vector<4x8x8xbf16> to vector<1x4x8x8xbf16>
    tpu.vector_store %arg9[%c0_22, %c0_23, %c0_24, %c0_25], %47 {strides = array<i32>} : memref<1x4x8x8xbf16, #tpu.memory_space<vmem>>, vector<1x4x8x8xbf16>,
    return
  }
  func.func @transform_0(%arg0: i32, %arg1: i32, %arg2: i32) -> (i32, i32, i32, i32) {
    %c0_i32 = arith.constant 0 : i32
    %c0_i32_0 = arith.constant 0 : i32
    %c0_i32_1 = arith.constant 0 : i32
    return %arg0, %arg2, %c0_i32, %c0_i32_0 : i32, i32, i32, i32
  }
  func.func @transform_1(%arg0: i32, %arg1: i32, %arg2: i32) -> (i32, i32, i32, i32) {
    %c1_i32 = arith.constant 1 : i32
    %0 = arith.addi %arg2, %c1_i32 : i32
    %c4_i32 = arith.constant 4 : i32
    %1 = arith.muli %0, %c4_i32 : i32
    %c0_i32 = arith.constant 0 : i32
    %c0_i32_0 = arith.constant 0 : i32
    %c0_i32_1 = arith.constant 0 : i32
    return %arg0, %1, %c0_i32, %c0_i32_0 : i32, i32, i32, i32
  }
  func.func @transform_2(%arg0: i32, %arg1: i32, %arg2: i32) -> (i32, i32, i32) {
    %c0_i32 = arith.constant 0 : i32
    %c0_i32_0 = arith.constant 0 : i32
    %c0_i32_1 = arith.constant 0 : i32
    return %c0_i32, %c0_i32_0, %arg1 : i32, i32, i32
  }
  func.func @transform_3(%arg0: i32, %arg1: i32, %arg2: i32) -> (i32, i32) {
    %c0_i32 = arith.constant 0 : i32
    %c0_i32_0 = arith.constant 0 : i32
    return %c0_i32, %arg1 : i32, i32
  }
  func.func @transform_4(%arg0: i32, %arg1: i32, %arg2: i32) -> (i32, i32) {
    %c0_i32 = arith.constant 0 : i32
    %c0_i32_0 = arith.constant 0 : i32
    return %c0_i32, %arg1 : i32, i32
  }
  func.func @transform_5(%arg0: i32, %arg1: i32, %arg2: i32) -> (i32, i32) {
    %c0_i32 = arith.constant 0 : i32
    %c0_i32_0 = arith.constant 0 : i32
    return %c0_i32, %arg1 : i32, i32
  }
  func.func @transform_6(%arg0: i32, %arg1: i32, %arg2: i32) -> (i32, i32, i32, i32) {
    %c0_i32 = arith.constant 0 : i32
    %c0_i32_0 = arith.constant 0 : i32
    return %arg0, %arg2, %c0_i32, %arg1 : i32, i32, i32, i32
  }
}

</mosaic_0001>

<bundles_post_ra>
// kernel: tpu_custom_call.1
= control target key start
LH: loop header
LB: loop body
LE: loop exit
PB: predicated region body
PF: predicated region fallthrough
CT: control target
= control target key end

     0   :  { %11 = vsyncpa [#allocation4], 0  ;;  %s3631_s0 = inlined_call_operand.vmem [shape: bf16[2,18,18,4], index: 0, kind: input, shape index: {}]   ;;  %s3632_s1 = inlined_call_operand.vmem [shape: bf16[2,18,18,4], index: 1, kind: input, shape index: {}]   ;;  %s3633_s2 = inlined_call_operand.vmem [shape: bf16[3,12,8], index: 2, kind: input, shape index: {}]   ;;  %s3634_s3 = inlined_call_operand.vmem [shape: f32[1,8], index: 3, kind: input, shape index: {}]   ;;  %s3635_s4 = inlined_call_operand.vmem [shape: f32[1,8], index: 4, kind: input, shape index: {}]   ;;  %s3636_s5 = inlined_call_operand.vmem [shape: f32[1,8], index: 5, kind: input, shape index: {}]   ;;  %s3637_s6 = inlined_call_operand.hbm [shape: bf16[2,8,8,8], index: 6, kind: output, shape index: {}]  }
   0x1   :  { %13 = vsyncpa [#allocation4 + $0x1], 0  ;;  %s2624_s21 = smov 0   ;;  %s2626_s22 = smov 0  }
   0x2   :  { %s2628_s23 = smov 0   ;;  %s2630_s24 = smov 0  }
   0x3   :  { %s2632_s25 = smov 0   ;;  %s2634_s26 = smov 0  }
   0x4   :  { %s2636_s27 = smov 0   ;;  %s2638_s28 = smov 0  }
   0x5 LB: > { %s2212_s29 = sadd.s32 4294967295, %s2580_s28   ;;  %s2213_s30 = sadd.s32 4294967294, %s2580_s28   ;;  %s2580_s28 = sphi %s2638_s28, %s19_s28   ;;  %s2576_s27 = sphi %s2636_s27, %s3671_s27   ;;  %s2572_s26 = sphi %s2634_s26, %s3670_s26   ;;  %s2568_s25 = sphi %s2632_s25, %s3669_s25   ;;  %s2564_s24 = sphi %s2630_s24, %s3668_s24   ;;  %s2560_s23 = sphi %s2628_s23, %s3667_s23   ;;  %s2556_s22 = sphi %s2626_s22, %s3666_s22   ;;  %s2552_s21 = sphi %s2624_s21, %s3665_s21  }
   0x6   : > { %s31_s7 = sadd.s32 1, %s2572_s26  ;;  %s38_s8 = sadd.s32 1, %s2576_s27 }
   0x7   : > { %p32_p0 = scmp.ge.s32.totalorder %s31_s7, 2  ;;  %p223_p1 = scmp.ne.s32.totalorder %s2560_s23, %s2556_s22 }
   0x8   : > { %p224_p2 = scmp.eq.s32.totalorder %s2212_s29, 3  ;;  %p229_p5 = scmp.ne.s32.totalorder %s2556_s22, %s2552_s21 }
   0x9   : > { %s3673_s7 = smov (%p32_p0, %s31_s7), 0  ;;  %s3675_s8 = smov (!%p32_p0, %s38_s8), %s2576_s27 }
   0xa   : > { %s207_s9 = ssub.s32 %s2572_s26, %s3673_s7  ;;  %p2675_p3 = por %p224_p2, %p223_p1 }
   0xb   : > { %p40_p4 = scmp.ge.s32.totalorder %s3675_s8, 2  ;;  %p230_p6 = scmp.eq.s32.totalorder %s2213_s30, 3 }
   0xc   : > { %p2222_p7 = scmp.ge.s32.totalorder %s2580_s28, 1  ;;  %p315_p9 = scmp.lt.s32.totalorder %s2580_s28, 5 }
   0xd   : > { %s3677_s8 = smov (%p40_p4, %s3675_s8), 0  ;;  %p2684_p8 = por %p230_p6, %p229_p5 }
   0xe   : > { %s206_s12 = ssub.s32 %s2576_s27, %s3677_s8  ;;  %s213_s13 = sadd.s32 1, %s2560_s23 }
   0xf   : > { %s208_s14 = sor.u32 %s207_s9, %s206_s12  ;;  %p316_p10 = pnand %p2222_p7, %p315_p9 }
  0x10   : > { %p211_p11 = scmp.eq.s32.totalorder %s208_s14, 0  ;;  %s2224_s16 = sshll.u32 (!%p316_p10), %s2564_s24, 3  ;;  %vm638_vm0 = vcmask (!%p316_p10), 1046528   ;;  %vm525_vm1 = vsmask.f32 (!%p316_p10), 7424  ;;  %vm679_vm2 = vcmask (!%p316_p10), 31744  }
  0x11   : > { %319 = sbr.rel (%p316_p10) target bundleno = 667 (0x29b), region = 44  ;;  %p386_p12 = scmp.lt.s32.totalorder (!%p316_p10), %s2568_s25, 1  ;;  %vm967_vm3 = vcmask (!%p316_p10), 1041408   ;;  %vm696_vm4 = vcmask (!%p316_p10), 64512   ;;  %vm816_vm5 = vcmask (!%p316_p10), 97280   ;;  %vm833_vm6 = vcmask (!%p316_p10), 195584  }
  0x12   : > { %s2693_s15 = scalar_select %p211_p11, %s2560_s23, %s213_s13  }
  0x13   : > { %p388_p13 = scmp.lt.s32.totalorder (!%p316_p10), %s2224_s16, 17  ;;  %s2344_s29 = sadd.s32 (!%p316_p10), 8, %s2224_s16  ;;  %vm950_vm7 = vcmask (!%p316_p10), 293888   ;;  %vm1537_vm8 = vcmask (!%p316_p10), 58368   ;;  %vm1986_vm9 = vcmask (!%p316_p10), 1041409   ;;  %vm1988_vm10 = vcmask (!%p316_p10), 1042434  }
  0x14   : > { %p406_p0 = scmp.lt.s32.totalorder (!%p316_p10), %s2344_s29, 17  ;;  %vm1990_vm11 = vcmask (!%p316_p10), 1043459   ;;  %vm1992_vm12 = vcmask (!%p316_p10), 1044484   ;;  %vm1994_vm13 = vcmask (!%p316_p10), 1045509   ;;  %vm1996_vm14 = vcmask (!%p316_p10), 1046534   ;;  %s377_s12 = sand.u32 (!%p316_p10), 1, %s2556_s22  }
  0x15   : > { %vm1998_vm15 = vcmask (!%p316_p10), 1047559   ;;  %s2299_s13 = sshll.u32 (!%p316_p10), %s2564_s24, 2 }
  0x18   : > { %s2698_s17 = scalar_select %p386_p12, %s2568_s25, 1 }
  0x19   : > { %s389_s18 = scalar_select %p388_p13, %s2224_s16, 17 }
  0x1a   : > { %s2387_s19 = smul.u32 54, %s2698_s17  ;;  %s3679_s29 = smov (!%p406_p0, %s2344_s29), 17 }
  0x1b   : > { %s2386_s20 = smul.u32 3, %s389_s18  ;;  %s2582_s16 = smov 8  }
  0x1c   : > { %s2388_s18 = smul.u32 3, %s3679_s29 }
  0x1d   : > { %s392_s30 = sadd.s32 %s2387_s19, %s2386_s20 }
  0x1e   : > { %s2225_s9 = sshll.u32 %s392_s30, 2  ;;  %s410_s20 = sadd.s32 %s2388_s18, %s2387_s19 }
  0x1f   : > { %s2706_s14 = scalar_lea.vmem %s3631_s0, %s2225_s9  ;;  %s2583_s30 = smov 4  }
  0x20   : > { %v2709_v0 = vld [vmem:[%s2706_s14 + $0x3c] sm:$0xff]   ;;  %v2712_v1 = vld [vmem:[%s2706_s14 + $0x44] ss:$0 sps:$4 sm:$0x11]   ;;  %v2715_v2 = vld [vmem:[%s2706_s14 + $0xc] sm:$0xff]   ;;  %s2228_s29 = sshll.u32 %s410_s20, 2 }
  0x21   : > { %v654_v3 = vrot.slane %v2709_v0, 1  ;;  %v655_v4 = vrot.slane %v2712_v1, 1  ;;  %v2469_v5 = vld [vmem:[%s2706_s14 + $0x14] ss:$0 sps:$4 sm:$0x11]   ;;  %v2723_v6 = vld [vmem:[%s2706_s14 + $0x48] sm:$0xff]   ;;  %s412_s9 = scalar_lea.vmem %s3632_s1, %s2228_s29 }
  0x22   : > { %v642_v7 = vrot.slane %v2715_v2, 1  ;;  %v2727_v8 = vld [vmem:[%s2706_s14 + $0x18] sm:$0xff]   ;;  %v643_v10 = vrot.slane %v2469_v5, 1  ;;  %v2471_v11 = vld [vmem:[%s2706_s14 + $0x50] ss:$0 sps:$4 sm:$0x11]  }
  0x23   : > { %v656_v9 = vsel %vm638_vm0, %v654_v3, %v655_v4  ;;  %v657_v12 = vrot.slane %v2723_v6, 1  ;;  %v645_v13 = vrot.slane %v2727_v8, 1  ;;  %v658_v15 = vrot.slane %v2471_v11, 1  ;;  %v2473_v16 = vld [vmem:[%s2706_s14 + $0x20] ss:$0 sps:$4 sm:$0x11]  }
  0x24   : > { %673 = vrot.lane.b32.xlu1 %v656_v9, %s2582_s16  ;;  %v644_v14 = vsel %vm638_vm0, %v642_v7, %v643_v10  ;;  %v646_v18 = vrot.slane %v2473_v16, 1  ;;  %v2739_v19 = vld [vmem:[%s2706_s14 + $0x54] sm:$0xff]   ;;  %v2475_v20 = vld [vmem:[%s2706_s14 + $0x5c] ss:$0 sps:$4 sm:$0x11]   ;;  %v2743_v21 = vld [vmem:[%s2706_s14 + $0x24] sm:$0xff]  }
  0x25   : > { %665 = vrot.lane.b32.xlu0 %v644_v14, %s2582_s16  ;;  %v659_v17 = vsel %vm638_vm0, %v657_v12, %v658_v15  ;;  %v660_v23 = vrot.slane %v2739_v19, 1  ;;  %v661_v24 = vrot.slane %v2475_v20, 1  ;;  %v2477_v25 = vld [vmem:[%s2706_s14 + $0x2c] ss:$0 sps:$4 sm:$0x11]   ;;  %v648_v26 = vrot.slane %v2743_v21, 1 }
  0x26   : > { %v647_v22 = vsel %vm638_vm0, %v645_v13, %v646_v18  ;;  %v551_v27 = vshrl.u32 %v2727_v8, 16  ;;  %v553_v28 = vshll.u32 %v2727_v8, 16  ;;  %v558_v29 = vshll.u32 %v2473_v16, 16  ;;  %v2764_v47 = vld [vmem:[%s2706_s14 + $0x38] ss:$0 sps:$4 sm:$0x11]  }
  0x27   : > { %v539_v30 = vshrl.u32 %v2715_v2, 16  ;;  %v662_v31 = vsel %vm638_vm0, %v660_v23, %v661_v24  ;;  %v649_v32 = vrot.slane %v2477_v25, 1  ;;  %v541_v33 = vshll.u32 %v2715_v2, 16  ;;  %v2770_v52 = vld [vmem:[%s2706_s14 + $0x30] sm:$0xff]   ;;  %v2790_v15 = vld [vmem:[%s412_s9] sm:$0xff]   ;;  %s2586_s18 = smov 24  }
  0x28   : > { %675 = vrot.lane.b32.xlu1 %v659_v17, %s2582_s16  ;;  %v546_v34 = vshll.u32 %v2469_v5, 16  ;;  %v555_v35 = vrot.slane %v553_v28, 1  ;;  %v560_v36 = vrot.slane %v558_v29, 1  ;;  %v599_v37 = vshrl.u32 %v2723_v6, 16  ;;  %v2800_v29 = vld [vmem:[%s2706_s14] sm:$0xff]  }
  0x29   : > { %667 = vrot.lane.b32.xlu0 %v647_v22, %s2582_s16  ;;  %v601_v38 = vshll.u32 %v2723_v6, 16  ;;  %v650_v39 = vsel %vm638_vm0, %v648_v26, %v649_v32  ;;  %v543_v40 = vrot.slane %v541_v33, 1  ;;  %v606_v42 = vshll.u32 %v2471_v11, 16  ;;  %v2481_v16 = vld [vmem:[%s412_s9 + $0x8] ss:$0 sps:$4 sm:$0x11]  }
  0x2a   : > { %v548_v41 = vrot.slane %v546_v34, 1  ;;  %v556_v43 = vor.u32 %v555_v35, %v551_v27  ;;  %v587_v45 = vshrl.u32 %v2709_v0, 16  ;;  %v589_v46 = vshll.u32 %v2709_v0, 16  ;;  %v2796_v26 = vld [vmem:[%s412_s9 + $0xc] sm:$0xff]  }
  0x2b   : > { %v603_v44 = vrot.slane %v601_v38, 1  ;;  %v544_v48 = vor.u32 %v543_v40, %v539_v30  ;;  %v608_v49 = vrot.slane %v606_v42, 1  ;;  %v594_v50 = vshll.u32 %v2712_v1, 16  ;;  %v2483_v28 = vld [vmem:[%s412_s9 + $0x14] ss:$0 sps:$4 sm:$0x11]  }
  0x2c   : > { %677 = vrot.lane.b32.xlu1 %v662_v31, %s2582_s16  ;;  %v611_v51 = vshrl.u32 %v2739_v19, 16  ;;  %v561_v53 = vsel %vm525_vm1, %v556_v43, %v560_v36  ;;  %v591_v55 = vrot.slane %v589_v46, 1  ;;  %v613_v56 = vshll.u32 %v2739_v19, 16  ;;  %s3578_s9 = scalar_lea.sflag [#allocation4], %s377_s12 }
  0x2d   : > { %669 = vrot.lane.b32.xlu0 %v650_v39, %s2582_s16  ;;  %v604_v54 = vor.u32 %v603_v44, %v599_v37  ;;  %v549_v57 = vsel %vm525_vm1, %v544_v48, %v548_v41  ;;  %v596_v58 = vrot.slane %v594_v50, 1  ;;  %v618_v59 = vshll.u32 %v2475_v20, 16  ;;  %v2485_v41 = vld [vmem:[%s2706_s14 + $0x8] ss:$0 sps:$4 sm:$0x11]   ;;  %s2585_s14 = smov 12  }
  0x2e   : > { %v563_v60 = vshrl.u32 %v2743_v21, 16  ;;  %v592_v62 = vor.u32 %v591_v55, %v587_v45  ;;  %v615_v63 = vrot.slane %v613_v56, 1  ;;  %v565_v1 = vshll.u32 %v2743_v21, 16 }
  0x2f   : > { %v609_v61 = vsel %vm525_vm1, %v604_v54, %v608_v49  ;;  %v620_v3 = vrot.slane %v618_v59, 1  ;;  %v570_v4 = vshll.u32 %v2477_v25, 16  ;;  %v575_v5 = vshrl.u32 %v2770_v52, 16 }
  0x30   : > { %626 = vrot.lane.b32.xlu1 %v561_v53, %s2583_s30  ;;  %v577_v7 = vshll.u32 %v2770_v52, 16  ;;  %v597_v9 = vsel %vm525_vm1, %v592_v62, %v596_v58  ;;  %v616_v10 = vor.u32 %v615_v63, %v611_v51  ;;  %v567_v11 = vrot.slane %v565_v1, 1 }
  0x31   : > { %624 = vrot.lane.b32.xlu0 %v549_v57, %s2583_s30  ;;  %v582_v12 = vshll.u32 %v2764_v47, 16  ;;  %v572_v13 = vrot.slane %v570_v4, 1  ;;  %v722_v23 = vshrl.u32 %v2790_v15, 16  ;;  %v724_v24 = vshll.u32 %v2790_v15, 16 }
  0x32   : > { %v579_v14 = vrot.slane %v577_v7, 1  ;;  %v621_v17 = vsel %vm525_vm1, %v616_v10, %v620_v3  ;;  %v568_v18 = vor.u32 %v567_v11, %v563_v60  ;;  %v729_v25 = vshll.u32 %v2481_v16, 16  ;;  %v2249_v4 = vld.sshfl [vmem:[%s3633_s2] sm:$0x33 pattern:$0x76325410] }
  0x33   : > { %v584_v20 = vrot.slane %v582_v12, 1  ;;  %v726_v30 = vrot.slane %v724_v24, 1  ;;  %v651_v32 = vrot.slane %v2770_v52, 1  ;;  %v652_v33 = vrot.slane %v2764_v47, 1 }
  0x34   : > { %634 = vrot.lane.b32.xlu1 %v609_v61, %s2583_s30  ;;  %v580_v22 = vor.u32 %v579_v14, %v575_v5  ;;  %v573_v27 = vsel %vm525_vm1, %v568_v18, %v572_v13  ;;  %v731_v31 = vrot.slane %v729_v25, 1  ;;  %v735_v34 = vrot.slane %v2790_v15, 1  ;;  %v2250_v10 = vld.sshfl [vmem:[%s3633_s2 + $0x4] sm:$0x3 pattern:$0x76325410] }
  0x35   : > { %632 = vrot.lane.b32.xlu0 %v597_v9, %s2583_s30  ;;  %v736_v35 = vrot.slane %v2481_v16, 1  ;;  %v755_v36 = vshll.u32 %v2796_v26, 16  ;;  %v727_v38 = vor.u32 %v726_v30, %v722_v23  ;;  %v753_v39 = vshrl.u32 %v2796_v26, 16 }
  0x36   : > { %v585_v37 = vsel %vm525_vm1, %v580_v22, %v584_v20  ;;  %v760_v40 = vshll.u32 %v2483_v28, 16  ;;  %v529_v43 = vshll.u32 %v2800_v29, 16  ;;  %v653_v45 = vsel %vm638_vm0, %v651_v32, %v652_v33  ;;  %v2251_v11 = vld.sshfl [vmem:[%s3633_s2 + $0x8] sm:$0x33 pattern:$0x76325410] }
  0x37   : > { %v757_v42 = vrot.slane %v755_v36, 1  ;;  %v732_v44 = vsel %vm525_vm1, %v727_v38, %v731_v31  ;;  %v737_v46 = vsel %vm638_vm0, %v735_v34, %v736_v35  ;;  %v766_v47 = vrot.slane %v2796_v26, 1  ;;  %v2252_v25 = vld.sshfl [vmem:[%s3633_s2 + $0xc] sm:$0x3 pattern:$0x76325410] }
  0x38   : > { %636 = vrot.lane.b32.xlu1 %v621_v17, %s2583_s30  ;;  %v767_v48 = vrot.slane %v2483_v28, 1  ;;  %v527_v49 = vshrl.u32 %v2800_v29, 16  ;;  %v762_v51 = vrot.slane %v760_v40, 1  ;;  %v531_v53 = vrot.slane %v529_v43, 1 }
  0x39   : > { %628 = vrot.lane.b32.xlu0 %v573_v27, %s2583_s30  ;;  %v758_v50 = vor.u32 %v757_v42, %v753_v39  ;;  %v534_v54 = vshll.u32 %v2485_v41, 16  ;;  %v639_v56 = vrot.slane %v2800_v29, 1  ;;  %v640_v60 = vrot.slane %v2485_v41, 1 }
  0x3a   : > { %v768_v55 = vsel %vm638_vm0, %v766_v47, %v767_v48  ;;  %v532_v58 = vor.u32 %v531_v53, %v527_v49  ;;  %v2584_v63 = vmov 1983009808   ;;  %v912_v3 = vlaneseq  ;;  %v2253_v17 = vld.sshfl [vmem:[%s3633_s2 + $0x10] sm:$0x33 pattern:$0x76325410] }
  0x3b   : > { %v763_v57 = vsel %vm525_vm1, %v758_v50, %v762_v51  ;;  %v536_v59 = vrot.slane %v534_v54, 1  ;;  %v641_v62 = vsel %vm638_vm0, %v639_v56, %v640_v60  ;;  %v910_v1 = vunpack.c.l.s4 %v2584_v63  ;;  %v2254_v38 = vld.sshfl [vmem:[%s3633_s2 + $0x14] sm:$0x3 pattern:$0x76325410] }
  0x3c   : > { %733 = vrot.lane.b32.xlu1 %v732_v44, %s2583_s30  ;;  %v869_v5 = vcombine.high %v2249_v4, %v2249_v4  ;;  %v913_v9 = vshrl.u32 %v912_v3, 7  ;;  %v908_v16 = vcombine.low %v2250_v10, %v2251_v11  ;;  %v884_v20 = vcombine.high %v2251_v11, %v2251_v11 }
  0x3d   : > { %630 = vrot.lane.b32.xlu0 %v585_v37, %s2583_s30  ;;  %v537_v61 = vsel %vm525_vm1, %v532_v58, %v536_v59  ;;  %v911_v7 = vunpack.c.0.s8 %v910_v1  ;;  %v899_v22 = vcombine.high %v2253_v17, %v2253_v17  ;;  %vm2029_vm0 = vcmask 60416  }
  0x3e   : > { %v907_v12 = vcombine.low %v2249_v4, %v869_v5  ;;  %v924_v27 = vcombine.low %v884_v20, %v2252_v25 }
  0x3f   : > { %v2839_v13 = vsub.s32 %v911_v7, %v913_v9  ;;  %v925_v28 = vcombine.low %v2253_v17, %v899_v22 }
  0x40   : > { %738 = vrot.lane.b32.xlu1 %v737_v46, %s2582_s16 }
  0x41   : > { %671 = vrot.lane.b32.xlu0 %v653_v45, %s2582_s16  ;;  %v915_v18 = vrot.slane %v907_v12, %v2839_v13  ;;  %v922_v24 = vrot.slane %v908_v16, %v2839_v13  ;;  %v932_v32 = vrot.slane %v924_v27, %v2839_v13  ;;  %v939_v33 = vrot.slane %v925_v28, %v2839_v13 }
  0x42   : > { %v947_v39 = vrot.slane %v2254_v38, %v2839_v13 }
  0x43   : > { %v923_v31 = vcombine.low %v915_v18, %v922_v24  ;;  %v940_v35 = vcombine.low %v932_v32, %v939_v33 }
  0x44   : > { %769 = vrot.lane.b32.xlu1 %v768_v55, %s2582_s16  ;;  %v969_v41 = vsel %vm967_vm3, %v947_v39, 0 }
  0x45   : > { %764 = vrot.lane.b32.xlu0 %v763_v57, %s2583_s30  ;;  %2356 = vmatprep.subr.bf16.mxu0 %v923_v31 }
  0x46   : > { %2378 = vmatprep.subr.bf16.mxu1 %v923_v31  ;;  %2357 = vmatpush3.bf16.msra.mxu0 %v923_v31 }
  0x47   : > { %2381 = vmatpush3.bf16.msra.mxu1 %v923_v31  ;;  %2358 = vmatprep.subr.bf16.mxu0 %v940_v35 }
  0x48   : > { %663 = vrot.lane.b32.xlu1 %v641_v62, %s2582_s16  ;;  %2379 = vmatprep.subr.bf16.mxu1 %v940_v35 }
  0x49   : > { %622 = vrot.lane.b32.xlu0 %v537_v61, %s2583_s30 }
  0x4a   : > { %2359 = vmatpush3.bf16.msra.mxu0 %v940_v35 }
  0x4b   : > { %2382 = vmatpush3.bf16.msra.mxu1 %v940_v35  ;;  %2384 = vmatprep.subr.msk.bf16.mxu0 %vm967_vm3, %v947_v39 }
  0x4c   : > { %2385 = vmatprep.subr.msk.bf16.mxu1 %vm967_vm3, %v947_v39 }
  0x4e   : > { %2361 = vmatpush3.bf16.msra.mxu0 %v969_v41 }
  0x4f   : > { %2383 = vmatpush3.bf16.msra.mxu1 %v969_v41 }
  0x96   : > { %v674_v14 = vpop.permute.xlu1 %673 }
  0x97   : > { %v666_v23 = vpop.permute.xlu0 %665 }
  0x9a   : > { %v676_v30 = vpop.permute.xlu1 %675 }
  0x9b   : > { %v668_v34 = vpop.permute.xlu0 %667 }
  0x9e   : > { %v678_v36 = vpop.permute.xlu1 %677 }
  0x9f   : > { %v670_v37 = vpop.permute.xlu0 %669 }
  0xa2   : > { %v627_v40 = vpop.permute.xlu1 %626 }
  0xa3   : > { %v625_v42 = vpop.permute.xlu0 %624  ;;  %v685_v45 = vsel %vm679_vm2, %v2727_v8, %v627_v40 }
  0xa4   : > { %v683_v43 = vsel %vm679_vm2, %v2715_v2, %v625_v42  ;;  %v2865_v50 = vsel %vm696_vm4, %v685_v45, %v668_v34 }
  0xa5   : > { %v700_v44 = vsel %vm696_vm4, %v683_v43, %v666_v23 }
  0xa6   : > { %783 = vrot.lane.b32.xlu0 %v700_v44, %s2585_s14  ;;  %v635_v46 = vpop.permute.xlu1 %634 }
  0xa7   : > { %v633_v47 = vpop.permute.xlu0 %632  ;;  %v693_v2 = vsel %vm679_vm2, %v2723_v6, %v635_v46 }
  0xa8   : > { %v691_v48 = vsel %vm679_vm2, %v2709_v0, %v633_v47  ;;  %v2873_v51 = vsel %vm696_vm4, %v693_v2, %v676_v30 }
  0xa9   : > { %v708_v49 = vsel %vm696_vm4, %v691_v48, %v674_v14 }
  0xaa   : > { %791 = vrot.lane.b32.xlu1 %v708_v49, %s2585_s14  ;;  %785 = vrot.lane.b32.xlu0 %v2865_v50, %s2585_s14  ;;  %v637_v53 = vpop.permute.xlu1 %636 }
  0xab   : > { %v629_v8 = vpop.permute.xlu0 %628  ;;  %v695_v55 = vsel %vm679_vm2, %v2739_v19, %v637_v53 }
  0xac   : > { %v687_v0 = vsel %vm679_vm2, %v2743_v21, %v629_v8  ;;  %v712_v58 = vsel %vm696_vm4, %v695_v55, %v678_v36 }
  0xad   : > { %v704_v54 = vsel %vm696_vm4, %v687_v0, %v670_v37 }
  0xae   : > { %793 = vrot.lane.b32.xlu1 %v2873_v51, %s2585_s14  ;;  %800 = vrot.lane.b32.xlu0 %v2865_v50, %s2586_s18  ;;  %v734_v21 = vpop.permute.xlu1 %733 }
  0xaf   : > { %v631_v6 = vpop.permute.xlu0 %630  ;;  %v741_v60 = vsel %vm679_vm2, %v2790_v15, %v734_v21 }
  0xb0   : > { %v689_v56 = vsel %vm679_vm2, %v2770_v52, %v631_v6  ;;  %v2944_v6 = vld [vmem:[%s3635_s4] ss:$0 sm:$0xff] }
  0xb2   : > { %808 = vrot.lane.b32.xlu1 %v2873_v51, %s2586_s18  ;;  %802 = vrot.lane.b32.xlu0 %v704_v54, %s2586_s18  ;;  %v739_v61 = vpop.permute.xlu1 %738 }
  0xb3   : > { %v672_v57 = vpop.permute.xlu0 %671  ;;  %v743_v19 = vsel %vm696_vm4, %v741_v60, %v739_v61 }
  0xb4   : > { %v706_v59 = vsel %vm696_vm4, %v689_v56, %v672_v57 }
  0xb6   : > { %810 = vrot.lane.b32.xlu1 %v712_v58, %s2586_s18  ;;  %787 = vrot.lane.b32.xlu0 %v704_v54, %s2585_s14  ;;  %v770_v63 = vpop.permute.xlu1 %769 }
  0xb7   : > { %v765_v52 = vpop.permute.xlu0 %764 }
  0xb8   : > { %v772_v62 = vsel %vm679_vm2, %v2796_v26, %v765_v52 }
  0xb9   : > { %v774_v1 = vsel %vm696_vm4, %v772_v62, %v770_v63 }
  0xba   : > { %795 = vrot.lane.b32.xlu1 %v712_v58, %s2585_s14  ;;  %789 = vrot.lane.b32.xlu0 %v706_v59, %s2585_s14  ;;  %v664_v3 = vpop.permute.xlu1 %663 }
  0xbb   : > { %v623_v15 = vpop.permute.xlu0 %622 }
  0xbc   : > { %v681_v5 = vsel %vm679_vm2, %v2800_v29, %v623_v15 }
  0xbd   : > { %v698_v10 = vsel %vm696_vm4, %v681_v5, %v664_v3 }
  0xbe   : > { %797 = vrot.lane.b32.xlu1 %v743_v19, %s2585_s14  ;;  %804 = vrot.lane.b32.xlu0 %v706_v59, %s2586_s18  ;;  %s2300_s14 = sshll.u32 %s2568_s25, 3 }
  0xbf   : > { %s3546_s24 = sadd.s32 %s2300_s14, %s2299_s13  ;;  %s2587_s14 = smov [#allocation3]  }
  0xc0   : > { %s2301_s29 = sshll.u32 %s3546_s24, 6 }
  0xc1   : > { %s3574_s19 = scalar_lea.hbm %s3637_s6, %s2301_s29 }
  0xc2   : > { %812 = vrot.lane.b32.xlu1 %v743_v19, %s2586_s18  ;;  %806 = vrot.lane.b32.xlu0 %v708_v49, %s2586_s18 }
  0xc6   : > { %814 = vrot.lane.b32.xlu1 %v774_v1, %s2586_s18  ;;  %s2223_s18 = sshll.u32 %s377_s12, 4 }
  0xc7   : > { %s379_s25 = scalar_lea.vmem [#allocation3], %s2223_s18  ;;  %s2490_s18 = sshll.u32 %s2587_s14, 4  ;;  %s2491_s18 = int_to_ptr.vmem [resolvable:$false] %s2490_s18 }
  0xc8   : > { %s2051_s20 = sshll.u32 %s379_s25, 4  ;;  %s2492_s24 = scalar_lea.vmem %s2491_s18, 512  ;;  %s3569_s20 = int_to_ptr.vmem [resolvable:$true] %s2051_s20 }
  0xc9   : > { %s2486_s13 = scalar_lea.vmem %s3569_s20, 256  ;;  %p2493_p5 = scmp.lt.s32.totalorder %s3569_s20, %s2491_s18 }
  0xca   : > { %p2487_p1 = scmp.ne.s32.totalorder %s3569_s20, %s2486_s13  ;;  %p2494_p6 = scmp.lt.s32.totalorder %s2492_s24, %s2486_s13 }
  0xcc   : > { %p2488_p2 = pnand %p2487_p1, %p2675_p3  ;;  %p2495_p7 = por %p2494_p6, %p2493_p5 }
  0xce   : > { %p2489_p4 = pneg %p2488_p2 }
  0xd0   : > { %p2496_p9 = pnand %p2495_p7, %p2489_p4 }
 0x118   : > { %v784_v4 = vpop.permute.xlu0 %783 }
 0x119   : > { %v818_v26 = vsel %vm816_vm5, %v698_v10, %v784_v4 }
 0x11c   : > { %v792_v7 = vpop.permute.xlu1 %791  ;;  %v786_v9 = vpop.permute.xlu0 %785 }
 0x11d   : > { %v826_v16 = vsel %vm816_vm5, %v706_v59, %v792_v7  ;;  %v820_v17 = vsel %vm816_vm5, %v700_v44, %v786_v9 }
 0x120   : > { %v794_v11 = vpop.permute.xlu1 %793  ;;  %v801_v12 = vpop.permute.xlu0 %800 }
 0x121   : > { %v835_v14 = vsel %vm833_vm6, %v818_v26, %v801_v12  ;;  %v828_v23 = vsel %vm816_vm5, %v708_v49, %v794_v11 }
 0x122   : > { %2362 = vmatprep.mubr.msk.bf16.mxu0 %vm950_vm7, %v835_v14 }
 0x124   : > { %v809_v29 = vpop.permute.xlu1 %808  ;;  %v803_v18 = vpop.permute.xlu0 %802 }
 0x125   : > { %v837_v20 = vsel %vm833_vm6, %v820_v17, %v803_v18  ;;  %v843_v22 = vsel %vm833_vm6, %v826_v16, %v809_v29 }
 0x126   : > { %2363 = vmatmul.mubr.msk.bf16.vlgmr.msra.gmra.mrb[0].mxu0 %vm950_vm7, %v837_v20  ;;  %2370 = vmatprep.mubr.msk.bf16.mxu1 %vm950_vm7, %v843_v22 }
 0x128   : > { %v811_v24 = vpop.permute.xlu1 %810  ;;  %v788_v25 = vpop.permute.xlu0 %787 }
 0x129   : > { %v845_v27 = vsel %vm833_vm6, %v828_v23, %v811_v24  ;;  %v822_v31 = vsel %vm816_vm5, %v2865_v50, %v788_v25  ;;  %v2935_v50 = vld [vmem:[%s3634_s3] ss:$0 sm:$0xff] }
 0x12a   : > { %2371 = vmatmul.mubr.msk.bf16.vlgmr.msra.gmra.mrb[0].mxu1 %vm950_vm7, %v845_v27 }
 0x12c   : > { %v796_v28 = vpop.permute.xlu1 %795  ;;  %v790_v30 = vpop.permute.xlu0 %789 }
 0x12d   : > { %v830_v35 = vsel %vm816_vm5, %v2873_v51, %v796_v28  ;;  %v824_v36 = vsel %vm816_vm5, %v704_v54, %v790_v30 }
 0x130   : > { %v798_v32 = vpop.permute.xlu1 %797  ;;  %v805_v33 = vpop.permute.xlu0 %804 }
 0x131   : > { %v839_v34 = vsel %vm833_vm6, %v822_v31, %v805_v33  ;;  %v832_v41 = vsel %vm816_vm5, %v712_v58, %v798_v32  ;;  %v2951_v58 = vld [vmem:[%s3636_s5] ss:$0 sm:$0xff] }
 0x132   : > { %2366 = vmatprep.mubr.msk.bf16.mxu0 %vm950_vm7, %v839_v34 }
 0x134   : > { %v813_v37 = vpop.permute.xlu1 %812  ;;  %v807_v38 = vpop.permute.xlu0 %806 }
 0x135   : > { %v847_v39 = vsel %vm833_vm6, %v830_v35, %v813_v37  ;;  %v841_v40 = vsel %vm833_vm6, %v824_v36, %v807_v38 }
 0x136   : > { %2367 = vmatmul.mubr.msk.bf16.gmra.mrb[4].mxu0 %vm950_vm7, %v841_v40  ;;  %2374 = vmatprep.mubr.msk.bf16.mxu1 %vm950_vm7, %v847_v39 }
 0x138   : > { %v815_v42 = vpop.permute.xlu1 %814 }
 0x139   : > { %v849_v43 = vsel %vm833_vm6, %v832_v41, %v815_v42 }
 0x13a   : > { %2375 = vmatmul.mubr.msk.bf16.gmra.mrb[4].mxu1 %vm950_vm7, %v849_v43 }
 0x1f9   : > { %v2364_v44 = vpop.f32.mrb[0].mxu0 }
 0x1fa   : > { %1070 = vst.msk [vmem:[#allocation2 + $0x10] sm:$0xff] %vm696_vm4, %v2364_v44  ;;  %v1005_v45 = vpop.f32.mrb[1].mxu0 }
 0x1fb   : > { %1068 = vst.msk [vmem:[#allocation2] sm:$0xff] %vm696_vm4, %v1005_v45  ;;  %v2365_v46 = vpop.f32.mrb[2].mxu0 }
 0x1fc   : > { %1071 = vst.msk [vmem:[#allocation2 + $0x18] sm:$0xff] %vm696_vm4, %v2365_v46  ;;  %v1008_v47 = vpop.f32.mrb[3].mxu0 }
 0x1fd   : > { %1069 = vst.msk [vmem:[#allocation2 + $0x8] sm:$0xff] %vm696_vm4, %v1008_v47  ;;  %v2372_v48 = vpop.f32.mrb[0].mxu1 }
 0x1fe   : > { %1078 = vst.msk [vmem:[#allocation2 + $0x50] sm:$0xff] %vm696_vm4, %v2372_v48  ;;  %v1037_v49 = vpop.f32.mrb[1].mxu1 }
 0x1ff   : > { %1076 = vst.msk [vmem:[#allocation2 + $0x40] sm:$0xff] %vm696_vm4, %v1037_v49  ;;  %v2373_v2 = vpop.f32.mrb[2].mxu1 }
 0x200   : > { %1079 = vst.msk [vmem:[#allocation2 + $0x58] sm:$0xff] %vm696_vm4, %v2373_v2  ;;  %v1040_v8 = vpop.f32.mrb[3].mxu1 }
 0x201   : > { %v1086_v51 = vld [vmem:[#allocation2 + $0x10] sm:$0xff]  ;;  %1077 = vst.msk [vmem:[#allocation2 + $0x48] sm:$0xff] %vm696_vm4, %v1040_v8 }
 0x202   : > { %v1109_v0 = vadd.f32 %v2935_v50, %v1086_v51  ;;  %v1084_v53 = vld [vmem:[#allocation2] sm:$0xff] }
 0x203   : > { %v1107_v54 = vadd.f32 %v2935_v50, %v1084_v53  ;;  %v1087_v55 = vld [vmem:[#allocation2 + $0x18] sm:$0xff] }
 0x204   : > { %v1125_v56 = vmax.f32 %v1109_v0, 0.0  ;;  %v1110_v21 = vadd.f32 %v2935_v50, %v1087_v55  ;;  %v1085_v57 = vld [vmem:[#allocation2 + $0x8] sm:$0xff] }
 0x205   : > { %v1123_v59 = vmax.f32 %v1107_v54, 0.0  ;;  %v1108_v60 = vadd.f32 %v2935_v50, %v1085_v57  ;;  %v1094_v61 = vld [vmem:[#allocation2 + $0x50] sm:$0xff] }
 0x206   : > { %v1148_v19 = vmul.f32 %v2944_v6, %v1125_v56  ;;  %v1126_v52 = vmax.f32 %v1110_v21, 0.0  ;;  %v1117_v62 = vadd.f32 %v2935_v50, %v1094_v61  ;;  %v1092_v63 = vld [vmem:[#allocation2 + $0x40] sm:$0xff] }
 0x207   : > { %v1146_v1 = vmul.f32 %v2944_v6, %v1123_v59  ;;  %v1124_v15 = vmax.f32 %v1108_v60, 0.0  ;;  %v1115_v3 = vadd.f32 %v2935_v50, %v1092_v63  ;;  %v1095_v4 = vld [vmem:[#allocation2 + $0x58] sm:$0xff] }
 0x208   : > { %v1171_v5 = vadd.f32 %v2951_v58, %v1148_v19  ;;  %v1149_v7 = vmul.f32 %v2944_v6, %v1126_v52  ;;  %v1133_v9 = vmax.f32 %v1117_v62, 0.0  ;;  %v2961_v10 = vadd.f32 %v2935_v50, %v1095_v4  ;;  %v1093_v26 = vld [vmem:[#allocation2 + $0x48] sm:$0xff] }
 0x209   : > { %v1169_v11 = vadd.f32 %v2951_v58, %v1146_v1  ;;  %v1147_v12 = vmul.f32 %v2944_v6, %v1124_v15  ;;  %v1131_v14 = vmax.f32 %v1115_v3, 0.0  ;;  %v2966_v16 = vadd.f32 %v2935_v50, %v1093_v26  ;;  %v2368_v17 = vpop.f32.mrb[4].mxu0 }
 0x20a   : > { %v1235_v29 = vcombine.high %v1171_v5, %v1171_v5  ;;  %v1242_v18 = vrot.slane %v1171_v5, %v2839_v13  ;;  %v2970_v20 = vadd.f32 %v2951_v58, %v1149_v7  ;;  %v1156_v22 = vmul.f32 %v2944_v6, %v1133_v9  ;;  %1074 = vst.msk [vmem:[#allocation2 + $0x30] sm:$0xff] %vm696_vm4, %v2368_v17  ;;  %v1021_v23 = vpop.f32.mrb[5].mxu0 }
 0x20b   : > { %v1201_v24 = vcombine.high %v1169_v11, %v1169_v11  ;;  %v1208_v25 = vrot.slane %v1169_v11, %v2839_v13  ;;  %v2976_v27 = vadd.f32 %v2951_v58, %v1147_v12  ;;  %v1154_v28 = vmul.f32 %v2944_v6, %v1131_v14  ;;  %1072 = vst.msk [vmem:[#allocation2 + $0x20] sm:$0xff] %vm696_vm4, %v1021_v23  ;;  %v2369_v30 = vpop.f32.mrb[6].mxu0 }
 0x20c   : > { %v2981_v31 = vrot.slane %v1235_v29, %v2839_v13  ;;  %v1250_v32 = vcombine.high %v1242_v18, %v1242_v18  ;;  %v1539_v33 = vsel %vm1537_vm8, %v1242_v18, -inf  ;;  %v1252_v34 = vcombine.high %v2970_v20, %v2970_v20  ;;  %1075 = vst.msk [vmem:[#allocation2 + $0x38] sm:$0xff] %vm696_vm4, %v2369_v30  ;;  %v1024_v35 = vpop.f32.mrb[7].mxu0 }
 0x20d   : > { %v2988_v36 = vrot.slane %v1201_v24, %v2839_v13  ;;  %v1216_v37 = vcombine.high %v1208_v25, %v1208_v25  ;;  %v1538_v38 = vsel %vm1537_vm8, %v1208_v25, -inf  ;;  %v2993_v39 = vrot.slane %v2970_v20, %v2839_v13  ;;  %1073 = vst.msk [vmem:[#allocation2 + $0x28] sm:$0xff] %vm696_vm4, %v1024_v35  ;;  %v2376_v40 = vpop.f32.mrb[4].mxu1 }
 0x20e   : > { %v1251_v41 = vcombine.high %v2981_v31, %v2981_v31  ;;  %v1548_v42 = vsel %vm1537_vm8, %v1250_v32, -inf  ;;  %v1557_v43 = vsel %vm1537_vm8, %v2981_v31, -inf  ;;  %v1540_v44 = vmax.f32 %v1538_v38, %v1539_v33  ;;  %1082 = vst.msk [vmem:[#allocation2 + $0x70] sm:$0xff] %vm696_vm4, %v2376_v40  ;;  %v1053_v45 = vpop.f32.mrb[5].mxu1 }
 0x20f   : > { %v1217_v46 = vcombine.high %v2988_v36, %v2988_v36  ;;  %v1547_v47 = vsel %vm1537_vm8, %v1216_v37, -inf  ;;  %v1556_v48 = vsel %vm1537_vm8, %v2988_v36, -inf  ;;  %1080 = vst.msk [vmem:[#allocation2 + $0x60] sm:$0xff] %vm696_vm4, %v1053_v45  ;;  %v2377_v2 = vpop.f32.mrb[6].mxu1  ;;  %v3014_v53 = vsel %vm1537_vm8, %v2993_v39, -inf }
 0x210   : > { %v1541_v8 = vrot.slane %v1540_v44, 4  ;;  %v1549_v51 = vmax.f32 %v1547_v47, %v1548_v42  ;;  %v3010_v0 = vmax.f32 %v1556_v48, %v1557_v43  ;;  %1083 = vst.msk [vmem:[#allocation2 + $0x78] sm:$0xff] %vm696_vm4, %v2377_v2  ;;  %v1056_v54 = vpop.f32.mrb[7].mxu1  ;;  %v1218_v55 = vcombine.high %v2976_v27, %v2976_v27 }
 0x211   : > { %v3021_v56 = vrot.slane %v2976_v27, %v2839_v13  ;;  %v1179_v21 = vadd.f32 %v2951_v58, %v1156_v22  ;;  %v1177_v57 = vadd.f32 %v2951_v58, %v1154_v28  ;;  %1081 = vst.msk [vmem:[#allocation2 + $0x68] sm:$0xff] %vm696_vm4, %v1056_v54  ;;  %v1134_v19 = vmax.f32 %v2961_v10, 0.0  ;;  %v1090_v24 = vld [vmem:[#allocation2 + $0x30] sm:$0xff] }
 0x212   : > { %v3026_v59 = vmax.f32 %v1540_v44, %v1541_v8  ;;  %v1550_v60 = vrot.slane %v1549_v51, 4  ;;  %v1559_v61 = vrot.slane %v3010_v0, 4  ;;  %v1132_v17 = vmax.f32 %v2966_v16, 0.0  ;;  %v1088_v25 = vld [vmem:[#allocation2 + $0x20] sm:$0xff] }
 0x213   : > { %v3034_v62 = vsel %vm1537_vm8, %v3021_v56, -inf  ;;  %v1371_v63 = vcombine.high %v1179_v21, %v1179_v21  ;;  %v1378_v1 = vrot.slane %v1179_v21, %v2839_v13  ;;  %v1337_v4 = vcombine.high %v1177_v57, %v1177_v57  ;;  %v1091_v8 = vld [vmem:[#allocation2 + $0x38] sm:$0xff] }
 0x214   : > { %v1543_v15 = vrot.slane %v3026_v59, 2  ;;  %v3038_v3 = vmax.f32 %v1549_v51, %v1550_v60  ;;  %v1344_v5 = vrot.slane %v1177_v57, %v2839_v13  ;;  %v1157_v26 = vmul.f32 %v2944_v6, %v1134_v19  ;;  %v1089_v51 = vld [vmem:[#allocation2 + $0x28] sm:$0xff] }
 0x215   : > { %v3042_v7 = vrot.slane %v1371_v63, %v2839_v13  ;;  %v1386_v9 = vcombine.high %v1378_v1, %v1378_v1  ;;  %v1683_v10 = vsel %vm1537_vm8, %v1378_v1, -inf  ;;  %v3047_v11 = vrot.slane %v1337_v4, %v2839_v13  ;;  %v1098_v19 = vld [vmem:[#allocation2 + $0x70] sm:$0xff] }
 0x216   : > { %v1352_v12 = vcombine.high %v1344_v5, %v1344_v5  ;;  %v1682_v14 = vsel %vm1537_vm8, %v1344_v5, -inf  ;;  %v3062_v16 = vadd.f32 %v2951_v58, %v1157_v26  ;;  %v1155_v38 = vmul.f32 %v2944_v6, %v1132_v17  ;;  %v1096_v63 = vld [vmem:[#allocation2 + $0x60] sm:$0xff] }
 0x217   : > { %v1692_v18 = vsel %vm1537_vm8, %v1386_v9, -inf  ;;  %v1701_v22 = vsel %vm1537_vm8, %v3042_v7, -inf  ;;  %v1684_v23 = vmax.f32 %v1682_v14, %v1683_v10  ;;  %v1700_v32 = vsel %vm1537_vm8, %v3047_v11, -inf  ;;  %v1099_v17 = vld [vmem:[#allocation2 + $0x78] sm:$0xff] }
 0x218   : > { %v1691_v30 = vsel %vm1537_vm8, %v1352_v12, -inf  ;;  %v3064_v37 = vmax.f32 %v1700_v32, %v1701_v22  ;;  %v1388_v40 = vcombine.high %v3062_v16, %v3062_v16  ;;  %v3071_v42 = vrot.slane %v3062_v16, %v2839_v13 }
 0x219   : > { %v1685_v33 = vrot.slane %v1684_v23, 4  ;;  %v1693_v35 = vmax.f32 %v1691_v30, %v1692_v18  ;;  %v1113_v43 = vadd.f32 %v2935_v50, %v1090_v24  ;;  %v1111_v44 = vadd.f32 %v2935_v50, %v1088_v25  ;;  %v1097_v18 = vld [vmem:[#allocation2 + $0x68] sm:$0xff] }
 0x21a   : > { %v3079_v2 = vadd.f32 %v2951_v58, %v1155_v38  ;;  %v3085_v21 = vsel %vm1537_vm8, %v3071_v42, -inf  ;;  %v1114_v12 = vadd.f32 %v2935_v50, %v1091_v8  ;;  %v1112_v14 = vadd.f32 %v2935_v50, %v1089_v51 }
 0x21b   : > { %v3075_v45 = vmax.f32 %v1684_v23, %v1685_v33  ;;  %v1694_v47 = vrot.slane %v1693_v35, 4  ;;  %v1129_v57 = vmax.f32 %v1113_v43, 0.0  ;;  %v1127_v60 = vmax.f32 %v1111_v44, 0.0 }
 0x21c   : > { %v1354_v5 = vcombine.high %v3079_v2, %v3079_v2  ;;  %v3094_v9 = vrot.slane %v3079_v2, %v2839_v13  ;;  %v1121_v24 = vadd.f32 %v2935_v50, %v1098_v19  ;;  %v1119_v25 = vadd.f32 %v2935_v50, %v1096_v63 }
 0x21d   : > { %v3088_v4 = vmax.f32 %v1693_v35, %v1694_v47  ;;  %v1152_v10 = vmul.f32 %v2944_v6, %v1129_v57  ;;  %v1150_v26 = vmul.f32 %v2944_v6, %v1127_v60  ;;  %v1130_v33 = vmax.f32 %v1114_v12, 0.0 }
 0x21e   : > { %v3104_v23 = vsel %vm1537_vm8, %v3094_v9, -inf  ;;  %v1128_v35 = vmax.f32 %v1112_v14, 0.0  ;;  %v1137_v38 = vmax.f32 %v1121_v24, 0.0  ;;  %v1135_v43 = vmax.f32 %v1119_v25, 0.0 }
 0x21f   : > { %v1175_v30 = vadd.f32 %v2951_v58, %v1152_v10  ;;  %v1173_v32 = vadd.f32 %v2951_v58, %v1150_v26  ;;  %v1122_v44 = vadd.f32 %v2935_v50, %v1099_v17  ;;  %v3112_v47 = vadd.f32 %v2935_v50, %v1097_v18 }
 0x220   : > { %v1153_v19 = vmul.f32 %v2944_v6, %v1130_v33  ;;  %v1151_v63 = vmul.f32 %v2944_v6, %v1128_v35  ;;  %v1160_v10 = vmul.f32 %v2944_v6, %v1137_v38  ;;  %v1158_v26 = vmul.f32 %v2944_v6, %v1135_v43 }
 0x221   : > { %v1303_v8 = vcombine.high %v1175_v30, %v1175_v30  ;;  %v1310_v51 = vrot.slane %v1175_v30, %v2839_v13  ;;  %v1269_v57 = vcombine.high %v1173_v32, %v1173_v32  ;;  %v1276_v60 = vrot.slane %v1173_v32, %v2839_v13 }
 0x222   : > { %v3129_v25 = vadd.f32 %v2951_v58, %v1153_v19  ;;  %v3132_v30 = vadd.f32 %v2951_v58, %v1151_v63 }
 0x223   : > { %v3121_v12 = vrot.slane %v1303_v8, %v2839_v13  ;;  %v1318_v14 = vcombine.high %v1310_v51, %v1310_v51  ;;  %v1611_v50 = vsel %vm1537_vm8, %v1310_v51, -inf  ;;  %v3125_v17 = vrot.slane %v1269_v57, %v2839_v13 }
 0x224   : > { %v1284_v18 = vcombine.high %v1276_v60, %v1276_v60  ;;  %v1610_v24 = vsel %vm1537_vm8, %v1276_v60, -inf  ;;  %v1320_v57 = vcombine.high %v3129_v25, %v3129_v25  ;;  %v3150_v63 = vrot.slane %v3129_v25, %v2839_v13 }
 0x225   : > { %v1620_v33 = vsel %vm1537_vm8, %v1318_v14, -inf  ;;  %v1629_v35 = vsel %vm1537_vm8, %v3121_v12, -inf  ;;  %v1612_v43 = vmax.f32 %v1610_v24, %v1611_v50  ;;  %v1628_v51 = vsel %vm1537_vm8, %v3125_v17, -inf }
 0x226   : > { %v1619_v8 = vsel %vm1537_vm8, %v1284_v18, -inf  ;;  %v3146_v19 = vmax.f32 %v1628_v51, %v1629_v35  ;;  %v1286_v14 = vcombine.high %v3132_v30, %v3132_v30  ;;  %v3156_v50 = vrot.slane %v3132_v30, %v2839_v13 }
 0x227   : > { %v1621_v60 = vmax.f32 %v1619_v8, %v1620_v33  ;;  %v1613_v54 = vrot.slane %v1612_v43, 4  ;;  %v1183_v18 = vadd.f32 %v2951_v58, %v1160_v10  ;;  %v1181_v24 = vadd.f32 %v2951_v58, %v1158_v26 }
 0x228   : > { %v3165_v25 = vsel %vm1537_vm8, %v3150_v63, -inf  ;;  %v3173_v10 = vsel %vm1537_vm8, %v3156_v50, -inf  ;;  %v1136_v35 = vmax.f32 %v3112_v47, 0.0 }
 0x229   : > { %v1622_v22 = vrot.slane %v1621_v60, 4  ;;  %v3167_v8 = vmax.f32 %v1612_v43, %v1613_v54  ;;  %v1439_v26 = vcombine.high %v1183_v18, %v1183_v18  ;;  %v1446_v29 = vrot.slane %v1183_v18, %v2839_v13 }
 0x22a   : > { %v1405_v28 = vcombine.high %v1181_v24, %v1181_v24  ;;  %v1412_v48 = vrot.slane %v1181_v24, %v2839_v13  ;;  %v1138_v43 = vmax.f32 %v1122_v44, 0.0  ;;  %v1159_v49 = vmul.f32 %v2944_v6, %v1136_v35 }
 0x22b   : > { %v3175_v51 = vmax.f32 %v1621_v60, %v1622_v22  ;;  %v3181_v54 = vrot.slane %v1439_v26, %v2839_v13  ;;  %v1454_v30 = vcombine.high %v1446_v29, %v1446_v29  ;;  %v1755_v32 = vsel %vm1537_vm8, %v1446_v29, -inf }
 0x22c   : > { %v3186_v38 = vrot.slane %v1405_v28, %v2839_v13  ;;  %v1420_v22 = vcombine.high %v1412_v48, %v1412_v48  ;;  %v1754_v24 = vsel %vm1537_vm8, %v1412_v48, -inf  ;;  %v1161_v26 = vmul.f32 %v2944_v6, %v1138_v43 }
 0x22d   : > { %v1773_v18 = vsel %vm1537_vm8, %v3181_v54, -inf  ;;  %v1764_v44 = vsel %vm1537_vm8, %v1454_v30, -inf  ;;  %v1756_v29 = vmax.f32 %v1754_v24, %v1755_v32  ;;  %v1232_v30 = vrot.slane %v1218_v55, %v2839_v13 }
 0x22e   : > { %v1763_v28 = vsel %vm1537_vm8, %v1420_v22, -inf  ;;  %v1772_v1 = vsel %vm1537_vm8, %v3186_v38, -inf  ;;  %v1184_v60 = vadd.f32 %v2951_v58, %v1161_v26  ;;  %v1266_v32 = vrot.slane %v1252_v34, %v2839_v13 }
 0x22f   : > { %v1765_v33 = vmax.f32 %v1763_v28, %v1764_v44  ;;  %v1757_v52 = vrot.slane %v1756_v29, 4  ;;  %v3202_v48 = vmax.f32 %v1772_v1, %v1773_v18  ;;  %v1182_v6 = vadd.f32 %v2951_v58, %v1159_v49 }
 0x230   : > { %v1456_v22 = vcombine.high %v1184_v60, %v1184_v60  ;;  %v3213_v24 = vrot.slane %v1184_v60, %v2839_v13  ;;  %v1234_v18 = vcombine.high %v1232_v30, %v1232_v30  ;;  %v1268_v26 = vcombine.high %v1266_v32, %v1266_v32 }
 0x231   : > { %v1766_v43 = vrot.slane %v1765_v33, 4  ;;  %v3216_v35 = vmax.f32 %v1756_v29, %v1757_v52  ;;  %v1422_v34 = vcombine.high %v1182_v6, %v1182_v6  ;;  %v3229_v58 = vrot.slane %v1182_v6, %v2839_v13 }
 0x232   : > { %v3225_v20 = vsel %vm1537_vm8, %v3213_v24, -inf  ;;  %v3232_v49 = vrot.slane %v1286_v14, %v2839_v13  ;;  %v3235_v52 = vrot.slane %v1320_v57, %v2839_v13  ;;  %v3247_v44 = vrot.slane %v1388_v40, %v2839_v13 }
 0x233   : > { %v3219_v27 = vmax.f32 %v1765_v33, %v1766_v43  ;;  %v3241_v33 = vrot.slane %v1354_v5, %v2839_v13  ;;  %v3250_v29 = vrot.slane %v1422_v34, %v2839_v13  ;;  %v3253_v14 = vrot.slane %v1456_v22, %v2839_v13 }
 0x234   : > { %v3259_v2 = vsel %vm1537_vm8, %v3229_v58, -inf  ;;  %v1302_v5 = vcombine.high %v3232_v49, %v3232_v49  ;;  %v1544_v22 = vmax.f32 %v3026_v59, %v1543_v15  ;;  %v1552_v6 = vrot.slane %v3038_v3, 2 }
 0x235   : > { %v1560_v34 = vmax.f32 %v3010_v0, %v1559_v61  ;;  %v1565_v55 = vsel %vm1537_vm8, %v1217_v46, -inf  ;;  %v1566_v43 = vsel %vm1537_vm8, %v1251_v41, -inf  ;;  %v1576_v28 = vmax.f32 %v3034_v62, %v3014_v53 }
 0x236   : > { %v3640_v59 = vcombine.high %v3021_v56, %v3021_v56  ;;  %v3641_v0 = vcombine.high %v2993_v39, %v2993_v39  ;;  %v1545_v61 = vrot.slane %v1544_v22, 1  ;;  %v1553_v46 = vmax.f32 %v3038_v3, %v1552_v6 }
 0x237   : > { %v1561_v57 = vrot.slane %v1560_v34, 2  ;;  %v1567_v31 = vmax.f32 %v1565_v55, %v1566_v43  ;;  %v1577_v47 = vrot.slane %v1576_v28, 4  ;;  %v1592_v1 = vsel %vm1537_vm8, %v1232_v30, -inf }
 0x238   : > { %v1583_v15 = vsel %vm1537_vm8, %v3640_v59, -inf  ;;  %v1584_v36 = vsel %vm1537_vm8, %v3641_v0, -inf  ;;  %v1593_v53 = vsel %vm1537_vm8, %v1266_v32, -inf  ;;  %v3301_v62 = vmax.f32 %v1544_v22, %v1545_v61 }
 0x239   : > { %v1585_v41 = vmax.f32 %v1583_v15, %v1584_v36  ;;  %v1554_v56 = vrot.slane %v1553_v46, 1  ;;  %v1562_v59 = vmax.f32 %v1560_v34, %v1561_v57  ;;  %v1568_v60 = vrot.slane %v1567_v31, 4 }
 0x23a   : > { %v1578_v13 = vmax.f32 %v1576_v28, %v1577_v47  ;;  %v1594_v40 = vmax.f32 %v1592_v1, %v1593_v53  ;;  %v1601_v0 = vsel %vm1537_vm8, %v1234_v18, -inf  ;;  %v1602_v43 = vsel %vm1537_vm8, %v1268_v26, -inf }
 0x23b   : > { %v1586_v39 = vrot.slane %v1585_v41, 4  ;;  %v3304_v16 = vmax.f32 %v1553_v46, %v1554_v56  ;;  %v1563_v3 = vrot.slane %v1562_v59, 1  ;;  %v1569_v55 = vmax.f32 %v1567_v31, %v1568_v60 }
 0x23c   : > { %v1579_v6 = vrot.slane %v1578_v13, 2  ;;  %v1595_v15 = vrot.slane %v1594_v40, 4  ;;  %v1603_v32 = vmax.f32 %v1601_v0, %v1602_v43  ;;  %v3642_v57 = vrot.slane %v3167_v8, 2 }
 0x23d   : > { %v1587_v30 = vmax.f32 %v1585_v41, %v1586_v39  ;;  %v3307_v22 = vmax.f32 %v1562_v59, %v1563_v3  ;;  %v1570_v36 = vrot.slane %v1569_v55, 2  ;;  %v1624_v1 = vrot.slane %v3175_v51, 2 }
 0x23e   : > { %v1616_v47 = vmax.f32 %v3167_v8, %v3642_v57  ;;  %v1580_v18 = vmax.f32 %v1578_v13, %v1579_v6  ;;  %v1596_v34 = vmax.f32 %v1594_v40, %v1595_v15  ;;  %v1604_v61 = vrot.slane %v1603_v32, 4 }
 0x23f   : > { %v1588_v28 = vrot.slane %v1587_v30, 2  ;;  %v1571_v60 = vmax.f32 %v1569_v55, %v1570_v36  ;;  %v1625_v26 = vmax.f32 %v3175_v51, %v1624_v1  ;;  %v3643_v31 = vrot.slane %v3146_v19, 4 }
 0x240   : > { %v1617_v46 = vrot.slane %v1616_v47, 1  ;;  %v1581_v53 = vrot.slane %v1580_v18, 1  ;;  %v1597_v59 = vrot.slane %v1596_v34, 2  ;;  %v1605_v39 = vmax.f32 %v1603_v32, %v1604_v61 }
 0x241   : > { %v1632_v41 = vmax.f32 %v3146_v19, %v3643_v31  ;;  %v1589_v56 = vmax.f32 %v1587_v30, %v1588_v28  ;;  %v1572_v0 = vrot.slane %v1571_v60, 1  ;;  %v1626_v3 = vrot.slane %v1625_v26, 1 }
 0x242   : > { %v3317_v8 = vmax.f32 %v1616_v47, %v1617_v46  ;;  %v3319_v43 = vmax.f32 %v1580_v18, %v1581_v53  ;;  %v1598_v55 = vmax.f32 %v1596_v34, %v1597_v59  ;;  %v1606_v6 = vrot.slane %v1605_v39, 2 }
 0x243   : > { %v1633_v13 = vrot.slane %v1632_v41, 2  ;;  %v1590_v40 = vrot.slane %v1589_v56, 1  ;;  %v3321_v15 = vmax.f32 %v1571_v60, %v1572_v0  ;;  %v3323_v51 = vmax.f32 %v1625_v26, %v1626_v3 }
 0x244   : > { %v3644_v19 = vcombine.high %v3125_v17, %v3125_v17  ;;  %v1599_v57 = vrot.slane %v1598_v55, 1  ;;  %v1607_v47 = vmax.f32 %v1605_v39, %v1606_v6  ;;  %v3645_v1 = vcombine.high %v3121_v12, %v3121_v12 }
 0x245   : > { %v1634_v36 = vmax.f32 %v1632_v41, %v1633_v13  ;;  %v3329_v32 = vmax.f32 %v1589_v56, %v1590_v40  ;;  %v1648_v61 = vmax.f32 %v3173_v10, %v3165_v25  ;;  %v3646_v60 = vcombine.high %v3156_v50, %v3156_v50 }
 0x246   : > { %v1637_v30 = vsel %vm1537_vm8, %v3644_v19, -inf  ;;  %v1638_v18 = vsel %vm1537_vm8, %v3645_v1, -inf  ;;  %v3341_v46 = vmax.f32 %v1598_v55, %v1599_v57  ;;  %v1608_v26 = vrot.slane %v1607_v47, 1 }
 0x247   : > { %v1635_v28 = vrot.slane %v1634_v36, 1  ;;  %v1639_v34 = vmax.f32 %v1637_v30, %v1638_v18  ;;  %v1655_v17 = vsel %vm1537_vm8, %v3646_v60, -inf  ;;  %v3647_v31 = vcombine.high %v3150_v63, %v3150_v63 }
 0x248   : > { %v1664_v41 = vsel %vm1537_vm8, %v3232_v49, -inf  ;;  %v1649_v25 = vrot.slane %v1648_v61, 4  ;;  %v3351_v59 = vmax.f32 %v1607_v47, %v1608_v26  ;;  %v1665_v50 = vsel %vm1537_vm8, %v3235_v52, -inf }
 0x249   : > { %v1656_v12 = vsel %vm1537_vm8, %v3647_v31, -inf  ;;  %v3349_v53 = vmax.f32 %v1634_v36, %v1635_v28  ;;  %v1640_v56 = vrot.slane %v1639_v34, 4  ;;  %v1673_v63 = vsel %vm1537_vm8, %v1302_v5, -inf }
 0x24a   : > { %v1657_v10 = vmax.f32 %v1655_v17, %v1656_v12  ;;  %v3648_v39 = vcombine.high %v3235_v52, %v3235_v52  ;;  %v1650_v13 = vmax.f32 %v1648_v61, %v1649_v25  ;;  %v1666_v55 = vmax.f32 %v1664_v41, %v1665_v50 }
 0x24b   : > { %v1641_v3 = vmax.f32 %v1639_v34, %v1640_v56  ;;  %v3649_v36 = vrot.slane %v3075_v45, 2  ;;  %v1696_v30 = vrot.slane %v3088_v4, 2  ;;  %v3650_v49 = vrot.slane %v3064_v37, 4 }
 0x24c   : > { %v1674_v0 = vsel %vm1537_vm8, %v3648_v39, -inf  ;;  %v1658_v40 = vrot.slane %v1657_v10, 4  ;;  %v1651_v47 = vrot.slane %v1650_v13, 2  ;;  %v1667_v1 = vrot.slane %v1666_v55, 4 }
 0x24d   : > { %v1675_v6 = vmax.f32 %v1673_v63, %v1674_v0  ;;  %v1688_v19 = vmax.f32 %v3075_v45, %v3649_v36  ;;  %v1704_v5 = vmax.f32 %v3064_v37, %v3650_v49  ;;  %v1642_v57 = vrot.slane %v1641_v3, 2 }
 0x24e   : > { %v1659_v52 = vmax.f32 %v1657_v10, %v1658_v40  ;;  %v1697_v34 = vmax.f32 %v3088_v4, %v1696_v30  ;;  %v1652_v17 = vmax.f32 %v1650_v13, %v1651_v47  ;;  %v1668_v31 = vmax.f32 %v1666_v55, %v1667_v1 }
 0x24f   : > { %v1676_v18 = vrot.slane %v1675_v6, 4  ;;  %v1689_v28 = vrot.slane %v1688_v19, 1  ;;  %v1705_v61 = vrot.slane %v1704_v5, 2  ;;  %v1643_v60 = vmax.f32 %v1641_v3, %v1642_v57 }
 0x250   : > { %v1660_v26 = vrot.slane %v1659_v52, 2  ;;  %v1698_v41 = vrot.slane %v1697_v34, 1  ;;  %v1653_v37 = vrot.slane %v1652_v17, 1  ;;  %v1669_v63 = vrot.slane %v1668_v31, 2 }
 0x251   : > { %v1677_v45 = vmax.f32 %v1675_v6, %v1676_v18  ;;  %v3371_v12 = vmax.f32 %v1688_v19, %v1689_v28  ;;  %v1706_v56 = vmax.f32 %v1704_v5, %v1705_v61  ;;  %v1644_v25 = vrot.slane %v1643_v60, 1 }
 0x252   : > { %v1661_v50 = vmax.f32 %v1659_v52, %v1660_v26  ;;  %v3373_v39 = vmax.f32 %v1697_v34, %v1698_v41  ;;  %v3651_v4 = vcombine.high %v3047_v11, %v3047_v11  ;;  %v3381_v40 = vmax.f32 %v1652_v17, %v1653_v37 }
 0x253   : > { %v1678_v10 = vrot.slane %v1677_v45, 2  ;;  %v1707_v0 = vrot.slane %v1706_v56, 1  ;;  %v3379_v13 = vmax.f32 %v1643_v60, %v1644_v25  ;;  %v1670_v6 = vmax.f32 %v1668_v31, %v1669_v63 }
 0x254   : > { %v1709_v3 = vsel %vm1537_vm8, %v3651_v4, -inf  ;;  %v1662_v55 = vrot.slane %v1661_v50, 1  ;;  %v3652_v30 = vcombine.high %v3042_v7, %v3042_v7  ;;  %v1720_v5 = vmax.f32 %v3104_v23, %v3085_v21 }
 0x255   : > { %v1679_v36 = vmax.f32 %v1677_v45, %v1678_v10  ;;  %v3383_v19 = vmax.f32 %v1706_v56, %v1707_v0  ;;  %v1671_v57 = vrot.slane %v1670_v6, 1  ;;  %v3653_v52 = vcombine.high %v3094_v9, %v3094_v9 }
 0x256   : > { %v1710_v49 = vsel %vm1537_vm8, %v3652_v30, -inf  ;;  %v3391_v11 = vmax.f32 %v1661_v50, %v1662_v55  ;;  %v1721_v28 = vrot.slane %v1720_v5, 4  ;;  %v3654_v34 = vcombine.high %v3071_v42, %v3071_v42 }
 0x257   : > { %v1711_v47 = vmax.f32 %v1709_v3, %v1710_v49  ;;  %v1727_v1 = vsel %vm1537_vm8, %v3653_v52, -inf  ;;  %v1680_v18 = vrot.slane %v1679_v36, 1  ;;  %v1736_v61 = vsel %vm1537_vm8, %v3241_v33, -inf }
 0x258   : > { %v1728_v7 = vsel %vm1537_vm8, %v3654_v34, -inf  ;;  %v3403_v21 = vmax.f32 %v1670_v6, %v1671_v57  ;;  %v1737_v17 = vsel %vm1537_vm8, %v3247_v44, -inf  ;;  %v1722_v26 = vmax.f32 %v1720_v5, %v1721_v28 }
 0x259   : > { %v1712_v23 = vrot.slane %v1711_v47, 4  ;;  %v1729_v60 = vmax.f32 %v1727_v1, %v1728_v7  ;;  %v3407_v9 = vmax.f32 %v1679_v36, %v1680_v18  ;;  %v1738_v31 = vmax.f32 %v1736_v61, %v1737_v17 }
 0x25a   : > { %v3655_v45 = vcombine.high %v3241_v33, %v3241_v33  ;;  %v3656_v25 = vcombine.high %v3247_v44, %v3247_v44  ;;  %v3657_v50 = vrot.slane %v3216_v35, 2  ;;  %v1723_v10 = vrot.slane %v1722_v26, 2 }
 0x25b   : > { %v1713_v41 = vmax.f32 %v1711_v47, %v1712_v23  ;;  %v1730_v56 = vrot.slane %v1729_v60, 4  ;;  %v1739_v0 = vrot.slane %v1738_v31, 4  ;;  %v1768_v3 = vrot.slane %v3219_v27, 2 }
 0x25c   : > { %v1745_v42 = vsel %vm1537_vm8, %v3655_v45, -inf  ;;  %v1746_v37 = vsel %vm1537_vm8, %v3656_v25, -inf  ;;  %v1760_v63 = vmax.f32 %v3216_v35, %v3657_v50  ;;  %v3658_v36 = vrot.slane %v3202_v48, 4 }
 0x25d   : > { %v1747_v4 = vmax.f32 %v1745_v42, %v1746_v37  ;;  %v1714_v55 = vrot.slane %v1713_v41, 2  ;;  %v1731_v33 = vmax.f32 %v1729_v60, %v1730_v56  ;;  %v1724_v49 = vmax.f32 %v1722_v26, %v1723_v10 }
 0x25e   : > { %v1761_v6 = vrot.slane %v1760_v63, 1  ;;  %v1776_v30 = vmax.f32 %v3202_v48, %v3658_v36  ;;  %v1740_v44 = vmax.f32 %v1738_v31, %v1739_v0  ;;  %v1769_v57 = vmax.f32 %v3219_v27, %v1768_v3 }
 0x25f   : > { %v1748_v5 = vrot.slane %v1747_v4, 4  ;;  %v1715_v47 = vmax.f32 %v1713_v41, %v1714_v55  ;;  %v1732_v52 = vrot.slane %v1731_v33, 2  ;;  %v1725_v18 = vrot.slane %v1724_v49, 1 }
 0x260   : > { %v3425_v35 = vmax.f32 %v1760_v63, %v1761_v6  ;;  %v1777_v1 = vrot.slane %v1776_v30, 2  ;;  %v1741_v28 = vrot.slane %v1740_v44, 2  ;;  %v1770_v7 = vrot.slane %v1769_v57, 1 }
 0x261   : > { %v1749_v34 = vmax.f32 %v1747_v4, %v1748_v5  ;;  %v1716_v61 = vrot.slane %v1715_v47, 1  ;;  %v1733_v23 = vmax.f32 %v1731_v33, %v1732_v52  ;;  %v3659_v48 = vcombine.high %v3186_v38, %v3186_v38 }
 0x262   : > { %v1778_v60 = vmax.f32 %v1776_v30, %v1777_v1  ;;  %v3431_v26 = vmax.f32 %v1724_v49, %v1725_v18  ;;  %v1742_v27 = vmax.f32 %v1740_v44, %v1741_v28  ;;  %v3433_v45 = vmax.f32 %v1769_v57, %v1770_v7 }
 0x263   : > { %v1781_v17 = vsel %vm1537_vm8, %v3659_v48, -inf  ;;  %v1750_v31 = vrot.slane %v1749_v34, 2  ;;  %v3435_v42 = vmax.f32 %v1715_v47, %v1716_v61  ;;  %v1734_v41 = vrot.slane %v1733_v23, 1 }
 0x264   : > { %v1779_v56 = vrot.slane %v1778_v60, 1  ;;  %v3660_v25 = vcombine.high %v3181_v54, %v3181_v54  ;;  %v1743_v50 = vrot.slane %v1742_v27, 1  ;;  %v1792_v10 = vmax.f32 %v3259_v2, %v3225_v20 }
 0x265   : > { %v1751_v63 = vmax.f32 %v1749_v34, %v1750_v31  ;;  %v3443_v0 = vmax.f32 %v1733_v23, %v1734_v41  ;;  %v3661_v3 = vcombine.high %v3229_v58, %v3229_v58  ;;  %v3662_v54 = vcombine.high %v3213_v24, %v3213_v24 }
 0x266   : > { %v1782_v37 = vsel %vm1537_vm8, %v3660_v25, -inf  ;;  %v3445_v4 = vmax.f32 %v1778_v60, %v1779_v56  ;;  %v3455_v6 = vmax.f32 %v1742_v27, %v1743_v50  ;;  %v1793_v49 = vrot.slane %v1792_v10, 4 }
 0x267   : > { %v1783_v38 = vmax.f32 %v1781_v17, %v1782_v37  ;;  %v1799_v55 = vsel %vm1537_vm8, %v3661_v3, -inf  ;;  %v1800_v33 = vsel %vm1537_vm8, %v3662_v54, -inf  ;;  %v1752_v36 = vrot.slane %v1751_v63, 1 }
 0x268   : > { %v1801_v20 = vmax.f32 %v1799_v55, %v1800_v33  ;;  %v1808_v2 = vsel %vm1537_vm8, %v3250_v29, -inf  ;;  %v1809_v44 = vsel %vm1537_vm8, %v3253_v14, -inf  ;;  %v3663_v58 = vcombine.high %v3250_v29, %v3250_v29 }
 0x269   : > { %v1784_v30 = vrot.slane %v1783_v38, 4  ;;  %v3465_v24 = vmax.f32 %v1751_v63, %v1752_v36  ;;  %v1794_v47 = vmax.f32 %v1792_v10, %v1793_v49  ;;  %v1810_v52 = vmax.f32 %v1808_v2, %v1809_v44 }
 0x26a   : > { %v1817_v5 = vsel %vm1537_vm8, %v3663_v58, -inf  ;;  %v1802_v1 = vrot.slane %v1801_v20, 4  ;;  %v3664_v18 = vcombine.high %v3253_v14, %v3253_v14  ;;  %v2311_v34 = vpack.c.bf16 %v3301_v62, %v3301_v62 }
 0x26b   : > { %v1785_v57 = vmax.f32 %v1783_v38, %v1784_v30  ;;  %v2312_v7 = vpack.c.bf16 %v3304_v16, %v3304_v16  ;;  %v1795_v61 = vrot.slane %v1794_v47, 2  ;;  %v1811_v23 = vrot.slane %v1810_v52, 4 }
 0x26c   : > { %v1818_v28 = vsel %vm1537_vm8, %v3664_v18, -inf  ;;  %v1803_v48 = vmax.f32 %v1801_v20, %v1802_v1  ;;  %v2313_v17 = vpack.c.bf16 %v3307_v22, %v3307_v22  ;;  %v2314_v27 = vpack.c.bf16 %v3321_v15, %v3321_v15 }
 0x26d   : > { %v1786_v29 = vrot.slane %v1785_v57, 2  ;;  %v1819_v60 = vmax.f32 %v1817_v5, %v1818_v28  ;;  %v2315_v14 = vpack.c.bf16 %v3319_v43, %v3319_v43  ;;  %v1796_v41 = vmax.f32 %v1794_v47, %v1795_v61 }
 0x26e   : > { %v1812_v62 = vmax.f32 %v1810_v52, %v1811_v23  ;;  %v1804_v25 = vrot.slane %v1803_v48, 2  ;;  %v2316_v16 = vpack.c.bf16 %v3329_v32, %v3329_v32  ;;  %v2317_v37 = vpack.c.bf16 %v3341_v46, %v3341_v46 }
 0x26f   : > { %v1787_v31 = vmax.f32 %v1785_v57, %v1786_v29  ;;  %v1820_v56 = vrot.slane %v1819_v60, 4  ;;  %v2318_v22 = vpack.c.bf16 %v3351_v59, %v3351_v59  ;;  %v1797_v63 = vrot.slane %v1796_v41, 1 }
 0x270   : > { %v1813_v15 = vrot.slane %v1812_v62, 2  ;;  %v1805_v10 = vmax.f32 %v1803_v48, %v1804_v25  ;;  %v2319_v43 = vpack.c.bf16 %v3317_v8, %v3317_v8  ;;  %v2320_v3 = vpack.c.bf16 %v3323_v51, %v3323_v51 }
 0x271   : > { %v1788_v50 = vrot.slane %v1787_v31, 1  ;;  %v1821_v38 = vmax.f32 %v1819_v60, %v1820_v56  ;;  %v2321_v32 = vpack.c.bf16 %v3349_v53, %v3349_v53  ;;  %v3495_v46 = vmax.f32 %v1796_v41, %v1797_v63 }
 0x272   : > { %v1814_v54 = vmax.f32 %v1812_v62, %v1813_v15  ;;  %v1806_v33 = vrot.slane %v1805_v10, 1  ;;  %v2322_v36 = vpack.c.bf16 %v3379_v13, %v3379_v13  ;;  %v2323_v30 = vpack.c.bf16 %v3381_v40, %v3381_v40 }
 0x273   : > { %v3493_v55 = vmax.f32 %v1787_v31, %v1788_v50  ;;  %v1822_v59 = vrot.slane %v1821_v38, 2  ;;  %v2324_v8 = vpack.c.bf16 %v3391_v11, %v3391_v11  ;;  %v2325_v53 = vpack.c.bf16 %v3403_v21, %v3403_v21 }
 0x274   : > { %v1815_v51 = vrot.slane %v1814_v54, 1  ;;  %v2326_v20 = vpack.c.bf16 %v3407_v9, %v3407_v9  ;;  %v1807_v2 = vmax.f32 %v1805_v10, %v1806_v33  ;;  %v2327_v44 = vpack.c.bf16 %v3371_v12, %v3371_v12 }
 0x275   : > { %v1823_v49 = vmax.f32 %v1821_v38, %v1822_v59  ;;  %v2328_v13 = vpack.c.bf16 %v3373_v39, %v3373_v39  ;;  %v2329_v40 = vpack.c.bf16 %v3383_v19, %v3383_v19  ;;  %v2330_v5 = vpack.c.bf16 %v3435_v42, %v3435_v42 }
 0x276   : > { %v1816_v58 = vmax.f32 %v1814_v54, %v1815_v51  ;;  %v2331_v21 = vpack.c.bf16 %v3431_v26, %v3431_v26  ;;  %v2332_v9 = vpack.c.bf16 %v3443_v0, %v3443_v0  ;;  %v2333_v12 = vpack.c.bf16 %v3455_v6, %v3455_v6 }
 0x277   : > { %v1824_v11 = vrot.slane %v1823_v49, 1  ;;  %v2334_v39 = vpack.c.bf16 %v3465_v24, %v3465_v24  ;;  %v2335_v19 = vpack.c.bf16 %v3425_v35, %v3425_v35  ;;  %v2336_v42 = vpack.c.bf16 %v3433_v45, %v3433_v45 }
 0x278   : > { %v2337_v26 = vpack.c.bf16 %v3445_v4, %v3445_v4  ;;  %v2338_v0 = vpack.c.bf16 %v3493_v55, %v3493_v55  ;;  %v2339_v6 = vpack.c.bf16 %v3495_v46, %v3495_v46  ;;  %v2340_v47 = vpack.c.bf16 %v1807_v2, %v1807_v2 }
 0x279   : > { %v1825_v57 = vmax.f32 %v1823_v49, %v1824_v11  ;;  %v2341_v24 = vpack.c.bf16 %v1816_v58, %v1816_v58  ;;  %v1954_v52 = vunpack.c.l.b16 %v2311_v34  ;;  %v1955_v1 = vunpack.c.l.b16 %v2312_v7 }
 0x27a   : > { %v1956_v18 = vunpack.c.l.b16 %v2313_v17  ;;  %v1957_v28 = vunpack.c.l.b16 %v2314_v27  ;;  %v1958_v45 = vunpack.c.l.b16 %v2315_v14  ;;  %v1959_v29 = vunpack.c.l.b16 %v2316_v16 }
 0x27b   : > { %v2342_v35 = vpack.c.bf16 %v1825_v57, %v1825_v57  ;;  %v1960_v4 = vunpack.c.l.b16 %v2317_v37  ;;  %v1961_v61 = vunpack.c.l.b16 %v2318_v22  ;;  %v1962_v23 = vunpack.c.l.b16 %v2319_v43 }
 0x27c   : > { %v1963_v60 = vunpack.c.l.b16 %v2320_v3  ;;  %v1964_v48 = vunpack.c.l.b16 %v2321_v32  ;;  %v1965_v31 = vunpack.c.l.b16 %v2322_v36  ;;  %v1966_v41 = vunpack.c.l.b16 %v2323_v30 }
 0x27d   : > { %v1967_v62 = vunpack.c.l.b16 %v2324_v8  ;;  %v1968_v34 = vunpack.c.l.b16 %v2325_v53  ;;  %v1969_v56 = vunpack.c.l.b16 %v2326_v20  ;;  %v1970_v7 = vunpack.c.l.b16 %v2327_v44 }
 0x27e   : > { %v1971_v17 = vunpack.c.l.b16 %v2328_v13  ;;  %v1972_v27 = vunpack.c.l.b16 %v2329_v40  ;;  %v1973_v14 = vunpack.c.l.b16 %v2330_v5  ;;  %v1974_v25 = vunpack.c.l.b16 %v2331_v21 }
 0x27f   : > { %v1975_v16 = vunpack.c.l.b16 %v2332_v9  ;;  %v1976_v37 = vunpack.c.l.b16 %v2333_v12  ;;  %v1977_v22 = vunpack.c.l.b16 %v2334_v39  ;;  %v1978_v50 = vunpack.c.l.b16 %v2335_v19 }
 0x280   : > { %v1979_v63 = vunpack.c.l.b16 %v2336_v42  ;;  %v1980_v15 = vunpack.c.l.b16 %v2337_v26  ;;  %v1981_v38 = vunpack.c.l.b16 %v2338_v0  ;;  %v1982_v10 = vunpack.c.l.b16 %v2339_v6 }
 0x281   : > { %v1983_v43 = vunpack.c.l.b16 %v2340_v47  ;;  %v1984_v3 = vunpack.c.l.b16 %v2341_v24  ;;  %v1985_v32 = vunpack.c.l.b16 %v2342_v35  ;;  %v1987_v55 = vsel %vm1986_vm9, %v1955_v1, %v1954_v52 }
 0x282   : > { %v2000_v46 = vsel %vm1986_vm9, %v1963_v60, %v1962_v23  ;;  %v2007_v54 = vsel %vm1986_vm9, %v1971_v17, %v1970_v7  ;;  %v2014_v59 = vsel %vm1986_vm9, %v1979_v63, %v1978_v50  ;;  %v1989_v33 = vsel %vm1988_vm10, %v1956_v18, %v1987_v55 }
 0x283   : > { %v2001_v36 = vsel %vm1988_vm10, %v1964_v48, %v2000_v46  ;;  %v2008_v30 = vsel %vm1988_vm10, %v1972_v27, %v2007_v54  ;;  %v2015_v8 = vsel %vm1988_vm10, %v1980_v15, %v2014_v59  ;;  %v1991_v51 = vsel %vm1990_vm11, %v1957_v28, %v1989_v33 }
 0x284   : > { %v2002_v49 = vsel %vm1990_vm11, %v1965_v31, %v2001_v36  ;;  %v2009_v53 = vsel %vm1990_vm11, %v1973_v14, %v2008_v30  ;;  %v2016_v20 = vsel %vm1990_vm11, %v1981_v38, %v2015_v8  ;;  %v1993_v2 = vsel %vm1992_vm12, %v1958_v45, %v1991_v51 }
 0x285   : > { %v2003_v44 = vsel %vm1992_vm12, %v1966_v41, %v2002_v49  ;;  %v2010_v13 = vsel %vm1992_vm12, %v1974_v25, %v2009_v53  ;;  %v2017_v40 = vsel %vm1992_vm12, %v1982_v10, %v2016_v20  ;;  %v1995_v58 = vsel %vm1994_vm13, %v1959_v29, %v1993_v2 }
 0x286   : > { %v2004_v11 = vsel %vm1994_vm13, %v1967_v62, %v2003_v44  ;;  %v2011_v5 = vsel %vm1994_vm13, %v1975_v16, %v2010_v13  ;;  %v2018_v21 = vsel %vm1994_vm13, %v1983_v43, %v2017_v40  ;;  %v1997_v9 = vsel %vm1996_vm14, %v1960_v4, %v1995_v58 }
 0x287   : > { %v2005_v12 = vsel %vm1996_vm14, %v1968_v34, %v2004_v11  ;;  %v2012_v39 = vsel %vm1996_vm14, %v1976_v37, %v2011_v5  ;;  %v2019_v19 = vsel %vm1996_vm14, %v1984_v3, %v2018_v21  ;;  %v1999_v57 = vsel %vm1998_vm15, %v1961_v61, %v1997_v9 }
 0x288   : > { %v2006_v42 = vsel %vm1998_vm15, %v1969_v56, %v2005_v12  ;;  %v2013_v26 = vsel %vm1998_vm15, %v1977_v22, %v2012_v39  ;;  %v2020_v0 = vsel %vm1998_vm15, %v1985_v32, %v2019_v19  ;;  %v2021_v6 = vpack.c.b16 %v1999_v57, %v1999_v57 }
 0x289   : > { %v2022_v47 = vpack.c.b16 %v2006_v42, %v2006_v42  ;;  %v2023_v24 = vpack.c.b16 %v2013_v26, %v2013_v26  ;;  %v2024_v52 = vpack.c.b16 %v2020_v0, %v2020_v0 }
 0x28a   : > { %2030 = vst.msk [vmem:[%s379_s25] sm:$0xf] %vm2029_vm0, %v2021_v6 }
 0x28b   : > { %2031 = vst.msk [vmem:[%s379_s25 + $0x4] sm:$0xf] %vm2029_vm0, %v2022_v47  ;;  %2032 = vst.msk [vmem:[%s379_s25 + $0x8] sm:$0xf] %vm2029_vm0, %v2023_v24 }
 0x28c   : > { %2033 = vst.msk [vmem:[%s379_s25 + $0xc] sm:$0xf] %vm2029_vm0, %v2024_v52 }
 0x28d   : > { %2499 = shalt.err (!%p2496_p9)
}
 0x28e   : > { %s2500_s12 = scalar_lea.hbm %s3574_s19, 256  ;;  %s2504_s16 = scalar_lea.hbm %s3637_s6, 1024 }
 0x28f   : > { %p2501_p10 = scmp.ne.s32.totalorder %s3574_s19, %s2500_s12  ;;  %p2505_p13 = scmp.lt.u32.totalorder %s3574_s19, %s3637_s6 }
 0x290   : > { %p2506_p0 = scmp.lt.u32.totalorder %s2504_s16, %s2500_s12  ;;  %p2508_p2 = scmp.lt.u32.totalorder %s2500_s12, %s3574_s19 }
 0x291   : > { %p2502_p11 = pnand %p2501_p10, %p2675_p3 }
 0x292   : > { %p2507_p1 = por %p2506_p0, %p2505_p13 }
 0x293   : > { %p2503_p12 = pneg %p2502_p11 }
 0x294   : > { %p2509_p4 = por %p2508_p2, %p2507_p1 }
 0x296   : > { %p2510_p5 = pnand %p2509_p4, %p2503_p12 }
 0x298   : > { %2513 = shalt.err (!%p2510_p5)
}
 0x299   : > { %s2588_s13 = smov 64  }
 0x29a   : > { %2389 = dma.vmem_to_hbm [thread:$0]  (%p2675_p3), %s3569_s20, 256, %s3574_s19, %s3578_s9, %s2588_s13, %s2588_s13, %s2583_s30  }
 0x29b PF: > { %p2395_p6 = scmp.ge.s32.totalorder %s2580_s28, 2  ;;  %s2066_s18 = sand.u32 1, %s2552_s21  }
 0x29c   : > { %s2067_s24 = scalar_lea.sflag [#allocation4], %s2066_s18 }
 0x29d   : > { %p2392_p7 = pnand %p2395_p6, %p2684_p8 }
 0x29f   : > { %2547 = dma.done.wait (!%p2392_p7), %s2067_s24, 256  }
 0x2a0   : > { %2549 = vsyncadd (!%p2392_p7), %s2067_s24, 4294967040  ;;  %s19_s28 = sadd.s32 1, %s2580_s28   ;;  %s3665_s21 = smov %s2556_s22 }
 0x2a1   : > { %p16_p9 = scmp.ge.s32.totalorder %s19_s28, 6   ;;  %s3666_s22 = smov %s2560_s23 }
 0x2a2   : > { %s3667_s23 = smov %s2693_s15  ;;  %s3668_s24 = smov %s2572_s26 }
 0x2a3   : > { %s3669_s25 = smov %s2576_s27  ;;  %s3670_s26 = smov %s3673_s7 }
 0x2a4   : > { %s3671_s27 = smov %s3677_s8  ;;  %18 = sbr.rel (!%p16_p9) target bundleno = 5 (0x5), region = 94 }
 0x2ab   :  { %2072 = vsyncpa [#allocation4], 1 }
 0x2ac   :  { %2074 = vsyncpa [#allocation4 + $0x1], 1 }

</bundles_post_ra>
